<compile_context>
chip_gen: v7x
topology: tpu7x:2x2x1
jax: 0.10.0
libtpu: 0.0.40
codegen_flags: <defaults>
</compile_context>

<pallas_src>
import functools

import jax
import jax.numpy as jnp
from jax import lax
from jax.experimental import pallas as pl
from jax.experimental.pallas import tpu as pltpu


def _after_dsc_kernel(x_ref, wdw_ref, b1_ref, wmat_ref, bmat_ref, out_ref,
                      xs_ref, *, B, H, W, Cin, Cout, down_sampling,
                      before_act, matmul_dtype):
    """One grid step = B images in lane-flat (H, W*C) layout.

    x_ref   : (B, H, W*Cin)          input block (bf16 or f32)
    wdw_ref : (9, W*Cin)      f32    depthwise 3x3 weights, bn1 scale folded
    b1_ref  : (1, W*Cin)      f32    bn1 bias
    wmat_ref: (K, W*Cout)     mm dt  fused block-diag 1x1 weight(s)
    bmat_ref: (1, W*Cout)     f32    fused bn2 (+ shortcut bn) bias
    out_ref : (B, H, W*Cout)  f32
    xs_ref  : (B, H+2, (W+2)*Cin) f32 scratch with a 1-pixel halo
    """
    WCin = W * Cin
    WCout = W * Cout

    # ---- stage the block into the padded scratch -------------------------
    # Only the 1-pixel border needs zeros; the interior is fully overwritten
    # every step.  The border is (cheaply) re-zeroed each step so the kernel
    # stays correct when the "parallel" grid axis is split across TensorCores
    # (a core whose first program_id != 0 still gets a clean halo).
    xf = x_ref[...].astype(jnp.float32)                      # (B, H, W*Cin)
    zrow = jnp.zeros((B, 1, (W + 2) * Cin), jnp.float32)
    xs_ref[:, 0:1, :] = zrow
    xs_ref[:, H + 1:H + 2, :] = zrow
    zcol = jnp.zeros((B, H + 2, Cin), jnp.float32)
    xs_ref[:, :, 0:Cin] = zcol
    xs_ref[:, :, (W + 1) * Cin:(W + 2) * Cin] = zcol
    xs_ref[:, 1:1 + H, Cin:Cin + WCin] = xf

    # ---- depthwise 3x3 (stride 1) on the VPU ------------------------------
    # Channels interleave with W on the lane axis, so every tap is a
    # full-width FMA and a 1-pixel horizontal shift is a lane offset of Cin.
    # bn1 scale is folded into the weights; the accumulator starts from the
    # bn1 bias, so no separate bias add and no zeros materialisation.
    # TODO(synk): at production sizes move the dw*Cin lane shifts onto the XLU
    # (pltpu.roll) or pre-stage lane-shifted row bands to avoid per-tap
    # relayouts on the load/store slots.
    wdw = wdw_ref[...]                                       # (9, W*Cin)
    acc = jnp.broadcast_to(b1_ref[...].reshape(1, 1, WCin), (B, H, WCin))
    for dh in range(3):
        for dw in range(3):
            k = 3 * dh + dw
            tap = xs_ref[:, dh:dh + H, dw * Cin:dw * Cin + WCin]
            acc = acc + tap * wdw[k:k + 1, :].reshape(1, 1, WCin)
    y = jnp.maximum(acc, 0.0)                                # relu(bn1(dw3x3))

    # ---- pointwise 1x1 conv(s): one MXU matmul ----------------------------
    # The pointwise conv over the lane-flat slab is a single matmul against a
    # block-diagonal (W*Cin, W*Cout) weight.  With down_sampling, the shortcut
    # 1x1 conv is fused by stacking [y | x] along K against the pre-stacked
    # weight and a combined bias (one MXU pass, one bias add).
    if down_sampling:
        y = jnp.concatenate([y, xf], axis=-1)                # (B, H, 2*W*Cin)
    mm = jnp.dot(y.reshape(B * H, y.shape[-1]).astype(matmul_dtype),
                 wmat_ref[...],
                 preferred_element_type=jnp.float32)         # (B*H, W*Cout)
    out = mm + bmat_ref[...]
    if not before_act:
        out = jnp.maximum(out, 0.0)
    out_ref[...] = out.reshape(B, H, WCout).astype(out_ref.dtype)


def _prepare_params(params, W, *, down_sampling, matmul_dtype):
    """Fold BN scales into the conv weights and repack for the lane-flat layout."""
    f32 = jnp.float32
    Cin = params["wdw"].shape[-1]
    Cout = params["w2"].shape[-1]

    # bn1 scale folded into the depthwise weight, tiled W times along lanes.
    wdw_f = params["wdw"].astype(f32) * params["s1"].reshape(1, 1, Cin)
    wdw_flat = jnp.tile(wdw_f, (1, 1, W)).reshape(9, W * Cin)
    b1_flat = jnp.tile(params["b1"].reshape(Cin), W).reshape(1, W * Cin)

    # bn2 scale folded into the 1x1 weight; block-diagonal expansion so the
    # pointwise conv over the (.., W*Cin) slab is a single matmul.
    eye_w = jnp.eye(W, dtype=f32)
    w2_f = params["w2"].astype(f32) * params["s2"].reshape(1, Cout)
    wmat = jnp.kron(eye_w, w2_f)                              # (W*Cin, W*Cout)
    bias = jnp.tile(params["b2"].reshape(Cout), W)
    if down_sampling:
        wsc_f = params["wsc"].astype(f32) * params["ssc"].reshape(1, Cout)
        wmat = jnp.concatenate([wmat, jnp.kron(eye_w, wsc_f)], axis=0)
        bias = bias + jnp.tile(params["bsc"].reshape(Cout), W)

    return (wdw_flat, b1_flat, wmat.astype(matmul_dtype),
            bias.reshape(1, W * Cout).astype(f32))


def _pick_b_tile(N, H, target_m=128):
    """Smallest divisor of N with B_tile*H >= target_m: fills the MXU M dim
    while keeping as many parallel grid steps as possible (megacore)."""
    for b in range(1, N + 1):
        if N % b == 0 and b * H >= target_m:
            return b
    return N


def after_dsc_aux(x_nchw, params, *, down_sampling=False, before_act=False,
                  stride=1, matmul_dtype=jnp.bfloat16, input_dtype=None,
                  target_m=128):
    assert stride == 1, "only stride=1 (module default) is implemented"
    # TODO(synk): strided depthwise + strided 1x1 shortcut (stride=2) path.
    N, Cin, H, W = x_nchw.shape
    Cout = params["w2"].shape[-1]
    if input_dtype is None:
        input_dtype = matmul_dtype    # bf16 in HBM halves the input DMA bytes

    B_tile = _pick_b_tile(N, H, target_m)

    # NCHW -> lane-flat (N, H, W*Cin); single fused XLA copy, no jnp.pad.
    # TODO(synk): if the surrounding model stays in NHWC / lane-flat layout,
    # drop this transpose and the inverse one below (each is an extra HBM pass).
    x_flat = jnp.transpose(x_nchw, (0, 2, 3, 1)).reshape(N, H, W * Cin)
    x_flat = x_flat.astype(input_dtype)

    wdw_flat, b1_flat, wmat, bmat = _prepare_params(
        params, W, down_sampling=down_sampling, matmul_dtype=matmul_dtype)

    kernel = functools.partial(
        _after_dsc_kernel, B=B_tile, H=H, W=W, Cin=Cin, Cout=Cout,
        down_sampling=down_sampling, before_act=before_act,
        matmul_dtype=matmul_dtype)

    # VMEM budget: double-buffered x/out blocks + halo scratch + resident
    # weights; cap the limit at 48 MiB so the same tiling fits v7x (64 MiB).
    in_bytes = jnp.dtype(input_dtype).itemsize
    mm_bytes = jnp.dtype(matmul_dtype).itemsize
    est = (2 * B_tile * H * W * Cin * in_bytes
           + 2 * B_tile * H * W * Cout * 4
           + B_tile * (H + 2) * (W + 2) * Cin * 4
           + wmat.size * mm_bytes
           + (wdw_flat.size + b1_flat.size + bmat.size) * 4)
    vmem_limit = int(min(48 * 1024 * 1024, max(2 * est, 32 * 1024 * 1024)))

    # Grid-invariant weights/biases: whole-array VMEM operands (resident once,
    # not pipelined / double-buffered across grid steps).
    wspec = pl.BlockSpec(memory_space=pltpu.MemorySpace.VMEM)

    out_flat = pl.pallas_call(
        kernel,
        out_shape=jax.ShapeDtypeStruct((N, H, W * Cout), jnp.float32),
        grid=(N // B_tile,),
        in_specs=[
            pl.BlockSpec((B_tile, H, W * Cin), lambda n: (n, 0, 0)),  # images
            wspec,   # depthwise weights
            wspec,   # bn1 bias
            wspec,   # fused 1x1 weight(s)
            wspec,   # fused bias
        ],
        out_specs=pl.BlockSpec((B_tile, H, W * Cout), lambda n: (n, 0, 0)),
        scratch_shapes=[
            pltpu.VMEM((B_tile, H + 2, (W + 2) * Cin), jnp.float32)],
        compiler_params=pltpu.CompilerParams(
            dimension_semantics=("parallel",),
            vmem_limit_bytes=vmem_limit),
    )(x_flat, wdw_flat, b1_flat, wmat, bmat)

    # (N, H, W*Cout) -> NCHW
    return jnp.transpose(out_flat.reshape(N, H, W, Cout), (0, 3, 1, 2))


# ------------------------- parameter construction -------------------------

def _fold_bn(gamma, beta, mean, var, eps=1e-5):
    scale = gamma / jnp.sqrt(var + eps)
    bias = beta - mean * scale
    return scale, bias


def init_params(key, Cin, Cout):
    ks = jax.random.split(key, 12)
    # depthwise conv weight: PyTorch (Cin, 1, 3, 3) -> kernel layout (3, 3, Cin)
    wdw = jax.random.normal(ks[0], (3, 3, Cin), jnp.float32) * 0.2
    s1, b1 = _fold_bn(
        1.0 + 0.1 * jax.random.normal(ks[1], (Cin,), jnp.float32),
        0.1 * jax.random.normal(ks[2], (Cin,), jnp.float32),
        0.1 * jax.random.normal(ks[3], (Cin,), jnp.float32),
        jax.random.uniform(ks[4], (Cin,), jnp.float32, 0.5, 1.5))
    # pointwise conv: PyTorch (Cout, Cin, 1, 1) -> (Cin, Cout)
    w2 = jax.random.normal(ks[5], (Cin, Cout), jnp.float32) * 0.2
    s2, b2 = _fold_bn(
        1.0 + 0.1 * jax.random.normal(ks[6], (Cout,), jnp.float32),
        0.1 * jax.random.normal(ks[7], (Cout,), jnp.float32),
        0.1 * jax.random.normal(ks[8], (Cout,), jnp.float32),
        jax.random.uniform(ks[9], (Cout,), jnp.float32, 0.5, 1.5))
    # shortcut 1x1 conv + bn (only used when down_sampling=True)
    wsc = jax.random.normal(ks[10], (Cin, Cout), jnp.float32) * 0.2
    ssc, bsc = _fold_bn(
        jnp.ones((Cout,), jnp.float32),
        jnp.zeros((Cout,), jnp.float32),
        0.1 * jax.random.normal(ks[11], (Cout,), jnp.float32),
        jnp.ones((Cout,), jnp.float32))
    return {"wdw": wdw, "s1": s1, "b1": b1,
            "w2": w2, "s2": s2, "b2": b2,
            "wsc": wsc, "ssc": ssc, "bsc": bsc}


# ------------------------- pure-JAX reference -------------------------

def reference(x_nchw, params, *, down_sampling=False, before_act=False):
    N, Cin, H, W = x_nchw.shape
    Cout = params["w2"].shape[-1]
    xn = jnp.transpose(x_nchw, (0, 2, 3, 1)).astype(jnp.float32)
    dn = ("NHWC", "HWIO", "NHWC")
    y = lax.conv_general_dilated(
        xn, params["wdw"].reshape(3, 3, 1, Cin), (1, 1), "SAME",
        dimension_numbers=dn, feature_group_count=Cin)
    y = jnp.maximum(y * params["s1"] + params["b1"], 0.0)
    y = lax.conv_general_dilated(
        y, params["w2"].reshape(1, 1, Cin, Cout), (1, 1), "SAME",
        dimension_numbers=dn)
    out = y * params["s2"] + params["b2"]
    if down_sampling:
        sc = lax.conv_general_dilated(
            xn, params["wsc"].reshape(1, 1, Cin, Cout), (1, 1), "SAME",
            dimension_numbers=dn)
        out = out + (sc * params["ssc"] + params["bsc"])
    if not before_act:
        out = jnp.maximum(out, 0.0)
    return jnp.transpose(out, (0, 3, 1, 2))


if __name__ == "__main__":
    key = jax.random.PRNGKey(0)
    k_x, k_p = jax.random.split(key)

    # N=16 with H=16 -> B_tile=8 (matmul M = 128), grid=(2,) parallel steps.
    N, Cin, H, W = 16, 4, 16, 16
    Cout = 8                       # W*Cout = 128 -> fully lane-dense output
    x = jax.random.normal(k_x, (N, Cin, H, W), jnp.float32)
    params = init_params(k_p, Cin, Cout)

    # f32 MXU path: tight check against the f32 XLA reference.
    for cfg in (dict(down_sampling=False, before_act=False),
                dict(down_sampling=True, before_act=False),
                dict(down_sampling=True, before_act=True)):
        out = jax.block_until_ready(
            after_dsc_aux(x, params, matmul_dtype=jnp.float32,
                          input_dtype=jnp.float32, **cfg))
        ref = reference(x, params, **cfg)
        assert out.shape == (N, Cout, H, W)
        err = float(jnp.max(jnp.abs(out - ref)))
        assert err < 1e-4, f"f32 mismatch {cfg}: max|err|={err}"

    # bf16 production path (default): bf16 input in HBM + bf16 MXU weights.
    for cfg in (dict(down_sampling=False, before_act=False),
                dict(down_sampling=True, before_act=False)):
        out = jax.block_until_ready(after_dsc_aux(x, params, **cfg))
        ref = reference(x, params, **cfg)
        rel = float(jnp.max(jnp.abs(out - ref)) /
                    (jnp.max(jnp.abs(ref)) + 1e-6))
        assert rel < 5e-2, f"bf16 mismatch {cfg}: rel err={rel}"

    # Small module-style batch (N=2): B_tile falls back to N, grid=(1,).
    x2 = jax.random.normal(jax.random.PRNGKey(1), (2, Cin, H, W), jnp.float32)
    out2 = jax.block_until_ready(
        after_dsc_aux(x2, params, matmul_dtype=jnp.float32,
                      input_dtype=jnp.float32, down_sampling=True))
    ref2 = reference(x2, params, down_sampling=True, before_act=False)
    assert float(jnp.max(jnp.abs(out2 - ref2))) < 1e-4

    print("KERNEL_OK")
</pallas_src>

<mosaic_0001>
module attributes {stable_mosaic.version = 11 : i64} {
  func.func @_after_dsc_kernel(%arg0: i32, %arg1: memref<8x16x64xf32, #tpu.memory_space<vmem>>, %arg2: memref<9x64xf32, #tpu.memory_space<vmem>>, %arg3: memref<1x64xf32, #tpu.memory_space<vmem>>, %arg4: memref<64x128xf32, #tpu.memory_space<vmem>>, %arg5: memref<1x128xf32, #tpu.memory_space<vmem>>, %arg6: memref<8x16x128xf32, #tpu.memory_space<vmem>>, %arg7: memref<8x18x72xf32, #tpu.memory_space<vmem>>) attributes {dimension_semantics = [#tpu.dimension_semantics<parallel>], iteration_bounds = array<i64: 2>, scalar_prefetch = 0 : i64, scratch_operands = 1 : i64, tpu.core_type = #tpu.core_type<tc>, window_params = [{transform_indices = @transform_0, window_bounds = array<i64: 8, 16, 64>}, {pipeline_mode = #tpu.pipeline_mode<synchronous>, transform_indices = @transform_1, window_bounds = array<i64: 9, 64>}, {pipeline_mode = #tpu.pipeline_mode<synchronous>, transform_indices = @transform_2, window_bounds = array<i64: 1, 64>}, {pipeline_mode = #tpu.pipeline_mode<synchronous>, transform_indices = @transform_3, window_bounds = array<i64: 64, 128>}, {pipeline_mode = #tpu.pipeline_mode<synchronous>, transform_indices = @transform_4, window_bounds = array<i64: 1, 128>}, {transform_indices = @transform_5, window_bounds = array<i64: 8, 16, 128>}]} {
    %c0 = arith.constant 0 : index
    %c0_0 = arith.constant 0 : index
    %c0_1 = arith.constant 0 : index
    %0 = vector.load %arg1[%c0, %c0_0, %c0_1] : memref<8x16x64xf32, #tpu.memory_space<vmem>>, vector<8x16x64xf32>
    %cst = arith.constant 0.000000e+00 : f32
    %1 = vector.broadcast %cst : f32 to vector<8x1x72xf32>
    %c0_2 = arith.constant 0 : index
    %c0_3 = arith.constant 0 : index
    %c0_4 = arith.constant 0 : index
    %2 = vector.load %arg7[%c0_2, %c0_3, %c0_4] : memref<8x18x72xf32, #tpu.memory_space<vmem>>, vector<8x1x72xf32>
    tpu.vector_store %arg7[%c0_2, %c0_3, %c0_4], %1 {strides = array<i32>} : memref<8x18x72xf32, #tpu.memory_space<vmem>>, vector<8x1x72xf32>,
    %c0_5 = arith.constant 0 : index
    %c17 = arith.constant 17 : index
    %c0_6 = arith.constant 0 : index
    %3 = vector.load %arg7[%c0_5, %c17, %c0_6] : memref<8x18x72xf32, #tpu.memory_space<vmem>>, vector<8x1x72xf32>
    tpu.vector_store %arg7[%c0_5, %c17, %c0_6], %1 {strides = array<i32>} : memref<8x18x72xf32, #tpu.memory_space<vmem>>, vector<8x1x72xf32>,
    %cst_7 = arith.constant 0.000000e+00 : f32
    %4 = vector.broadcast %cst_7 : f32 to vector<8x18x4xf32>
    %c0_8 = arith.constant 0 : index
    %c0_9 = arith.constant 0 : index
    %c0_10 = arith.constant 0 : index
    %5 = vector.load %arg7[%c0_8, %c0_9, %c0_10] : memref<8x18x72xf32, #tpu.memory_space<vmem>>, vector<8x18x4xf32>
    tpu.vector_store %arg7[%c0_8, %c0_9, %c0_10], %4 {strides = array<i32>} : memref<8x18x72xf32, #tpu.memory_space<vmem>>, vector<8x18x4xf32>,
    %c0_11 = arith.constant 0 : index
    %c0_12 = arith.constant 0 : index
    %c68 = arith.constant 68 : index
    %6 = vector.load %arg7[%c0_11, %c0_12, %c68] : memref<8x18x72xf32, #tpu.memory_space<vmem>>, vector<8x18x4xf32>
    tpu.vector_store %arg7[%c0_11, %c0_12, %c68], %4 {strides = array<i32>} : memref<8x18x72xf32, #tpu.memory_space<vmem>>, vector<8x18x4xf32>,
    %c0_13 = arith.constant 0 : index
    %c1 = arith.constant 1 : index
    %c4 = arith.constant 4 : index
    %7 = vector.load %arg7[%c0_13, %c1, %c4] : memref<8x18x72xf32, #tpu.memory_space<vmem>>, vector<8x16x64xf32>
    tpu.vector_store %arg7[%c0_13, %c1, %c4], %0 {strides = array<i32>} : memref<8x18x72xf32, #tpu.memory_space<vmem>>, vector<8x16x64xf32>,
    %c0_14 = arith.constant 0 : index
    %c0_15 = arith.constant 0 : index
    %8 = vector.load %arg2[%c0_14, %c0_15] : memref<9x64xf32, #tpu.memory_space<vmem>>, vector<9x64xf32>
    %c0_16 = arith.constant 0 : index
    %c0_17 = arith.constant 0 : index
    %9 = vector.load %arg3[%c0_16, %c0_17] : memref<1x64xf32, #tpu.memory_space<vmem>>, vector<1x64xf32>
    %10 = vector.shape_cast %9 : vector<1x64xf32> to vector<1x1x64xf32>
    %11 = vector.shape_cast %10 : vector<1x1x64xf32> to vector<1x1x64xf32>
    %12 = vector.broadcast %11 : vector<1x1x64xf32> to vector<8x16x64xf32>
    %c0_18 = arith.constant 0 : index
    %c0_19 = arith.constant 0 : index
    %c0_20 = arith.constant 0 : index
    %13 = vector.load %arg7[%c0_18, %c0_19, %c0_20] : memref<8x18x72xf32, #tpu.memory_space<vmem>>, vector<8x16x64xf32>
    %14 = vector.extract_strided_slice %8 {offsets = [0, 0], sizes = [1, 64], strides = [1, 1]} : vector<9x64xf32> to vector<1x64xf32>
    %15 = vector.shape_cast %14 : vector<1x64xf32> to vector<1x1x64xf32>
    %16 = vector.broadcast %15 : vector<1x1x64xf32> to vector<8x16x64xf32>
    %17 = arith.mulf %13, %16 : vector<8x16x64xf32>
    %18 = arith.addf %12, %17 : vector<8x16x64xf32>
    %c0_21 = arith.constant 0 : index
    %c0_22 = arith.constant 0 : index
    %c4_23 = arith.constant 4 : index
    %19 = vector.load %arg7[%c0_21, %c0_22, %c4_23] : memref<8x18x72xf32, #tpu.memory_space<vmem>>, vector<8x16x64xf32>
    %20 = vector.extract_strided_slice %8 {offsets = [1, 0], sizes = [1, 64], strides = [1, 1]} : vector<9x64xf32> to vector<1x64xf32>
    %21 = vector.shape_cast %20 : vector<1x64xf32> to vector<1x1x64xf32>
    %22 = vector.broadcast %21 : vector<1x1x64xf32> to vector<8x16x64xf32>
    %23 = arith.mulf %19, %22 : vector<8x16x64xf32>
    %24 = arith.addf %18, %23 : vector<8x16x64xf32>
    %c0_24 = arith.constant 0 : index
    %c0_25 = arith.constant 0 : index
    %c8 = arith.constant 8 : index
    %25 = vector.load %arg7[%c0_24, %c0_25, %c8] : memref<8x18x72xf32, #tpu.memory_space<vmem>>, vector<8x16x64xf32>
    %26 = vector.extract_strided_slice %8 {offsets = [2, 0], sizes = [1, 64], strides = [1, 1]} : vector<9x64xf32> to vector<1x64xf32>
    %27 = vector.shape_cast %26 : vector<1x64xf32> to vector<1x1x64xf32>
    %28 = vector.broadcast %27 : vector<1x1x64xf32> to vector<8x16x64xf32>
    %29 = arith.mulf %25, %28 : vector<8x16x64xf32>
    %30 = arith.addf %24, %29 : vector<8x16x64xf32>
    %c0_26 = arith.constant 0 : index
    %c1_27 = arith.constant 1 : index
    %c0_28 = arith.constant 0 : index
    %31 = vector.load %arg7[%c0_26, %c1_27, %c0_28] : memref<8x18x72xf32, #tpu.memory_space<vmem>>, vector<8x16x64xf32>
    %32 = vector.extract_strided_slice %8 {offsets = [3, 0], sizes = [1, 64], strides = [1, 1]} : vector<9x64xf32> to vector<1x64xf32>
    %33 = vector.shape_cast %32 : vector<1x64xf32> to vector<1x1x64xf32>
    %34 = vector.broadcast %33 : vector<1x1x64xf32> to vector<8x16x64xf32>
    %35 = arith.mulf %31, %34 : vector<8x16x64xf32>
    %36 = arith.addf %30, %35 : vector<8x16x64xf32>
    %c0_29 = arith.constant 0 : index
    %c1_30 = arith.constant 1 : index
    %c4_31 = arith.constant 4 : index
    %37 = vector.load %arg7[%c0_29, %c1_30, %c4_31] : memref<8x18x72xf32, #tpu.memory_space<vmem>>, vector<8x16x64xf32>
    %38 = vector.extract_strided_slice %8 {offsets = [4, 0], sizes = [1, 64], strides = [1, 1]} : vector<9x64xf32> to vector<1x64xf32>
    %39 = vector.shape_cast %38 : vector<1x64xf32> to vector<1x1x64xf32>
    %40 = vector.broadcast %39 : vector<1x1x64xf32> to vector<8x16x64xf32>
    %41 = arith.mulf %37, %40 : vector<8x16x64xf32>
    %42 = arith.addf %36, %41 : vector<8x16x64xf32>
    %c0_32 = arith.constant 0 : index
    %c1_33 = arith.constant 1 : index
    %c8_34 = arith.constant 8 : index
    %43 = vector.load %arg7[%c0_32, %c1_33, %c8_34] : memref<8x18x72xf32, #tpu.memory_space<vmem>>, vector<8x16x64xf32>
    %44 = vector.extract_strided_slice %8 {offsets = [5, 0], sizes = [1, 64], strides = [1, 1]} : vector<9x64xf32> to vector<1x64xf32>
    %45 = vector.shape_cast %44 : vector<1x64xf32> to vector<1x1x64xf32>
    %46 = vector.broadcast %45 : vector<1x1x64xf32> to vector<8x16x64xf32>
    %47 = arith.mulf %43, %46 : vector<8x16x64xf32>
    %48 = arith.addf %42, %47 : vector<8x16x64xf32>
    %c0_35 = arith.constant 0 : index
    %c2 = arith.constant 2 : index
    %c0_36 = arith.constant 0 : index
    %49 = vector.load %arg7[%c0_35, %c2, %c0_36] : memref<8x18x72xf32, #tpu.memory_space<vmem>>, vector<8x16x64xf32>
    %50 = vector.extract_strided_slice %8 {offsets = [6, 0], sizes = [1, 64], strides = [1, 1]} : vector<9x64xf32> to vector<1x64xf32>
    %51 = vector.shape_cast %50 : vector<1x64xf32> to vector<1x1x64xf32>
    %52 = vector.broadcast %51 : vector<1x1x64xf32> to vector<8x16x64xf32>
    %53 = arith.mulf %49, %52 : vector<8x16x64xf32>
    %54 = arith.addf %48, %53 : vector<8x16x64xf32>
    %c0_37 = arith.constant 0 : index
    %c2_38 = arith.constant 2 : index
    %c4_39 = arith.constant 4 : index
    %55 = vector.load %arg7[%c0_37, %c2_38, %c4_39] : memref<8x18x72xf32, #tpu.memory_space<vmem>>, vector<8x16x64xf32>
    %56 = vector.extract_strided_slice %8 {offsets = [7, 0], sizes = [1, 64], strides = [1, 1]} : vector<9x64xf32> to vector<1x64xf32>
    %57 = vector.shape_cast %56 : vector<1x64xf32> to vector<1x1x64xf32>
    %58 = vector.broadcast %57 : vector<1x1x64xf32> to vector<8x16x64xf32>
    %59 = arith.mulf %55, %58 : vector<8x16x64xf32>
    %60 = arith.addf %54, %59 : vector<8x16x64xf32>
    %c0_40 = arith.constant 0 : index
    %c2_41 = arith.constant 2 : index
    %c8_42 = arith.constant 8 : index
    %61 = vector.load %arg7[%c0_40, %c2_41, %c8_42] : memref<8x18x72xf32, #tpu.memory_space<vmem>>, vector<8x16x64xf32>
    %62 = vector.extract_strided_slice %8 {offsets = [8, 0], sizes = [1, 64], strides = [1, 1]} : vector<9x64xf32> to vector<1x64xf32>
    %63 = vector.shape_cast %62 : vector<1x64xf32> to vector<1x1x64xf32>
    %64 = vector.broadcast %63 : vector<1x1x64xf32> to vector<8x16x64xf32>
    %65 = arith.mulf %61, %64 : vector<8x16x64xf32>
    %66 = arith.addf %60, %65 : vector<8x16x64xf32>
    %cst_43 = arith.constant 0.000000e+00 : f32
    %67 = vector.broadcast %cst_43 : f32 to vector<8x16x64xf32>
    %68 = arith.maximumf %66, %67 : vector<8x16x64xf32>
    %69 = vector.shape_cast %68 : vector<8x16x64xf32> to vector<128x64xf32>
    %c0_44 = arith.constant 0 : index
    %c0_45 = arith.constant 0 : index
    %70 = vector.load %arg4[%c0_44, %c0_45] : memref<64x128xf32, #tpu.memory_space<vmem>>, vector<64x128xf32>
    %cst_46 = arith.constant dense<0.000000e+00> : vector<128x128xf32>
    %71 = tpu.matmul %69, %70, %cst_46 {dimension_numbers = #tpu.dot_dimension_numbers<[1], [0], [0], [1], [0, 0, 1, 1], [], []>} : vector<128x64xf32>, vector<64x128xf32>, vector<128x128xf32> -> vector<128x128xf32>
    %c0_47 = arith.constant 0 : index
    %c0_48 = arith.constant 0 : index
    %72 = vector.load %arg5[%c0_47, %c0_48] : memref<1x128xf32, #tpu.memory_space<vmem>>, vector<1x128xf32>
    %73 = vector.broadcast %72 : vector<1x128xf32> to vector<128x128xf32>
    %74 = arith.addf %71, %73 : vector<128x128xf32>
    %cst_49 = arith.constant 0.000000e+00 : f32
    %75 = vector.broadcast %cst_49 : f32 to vector<128x128xf32>
    %76 = arith.maximumf %74, %75 : vector<128x128xf32>
    %77 = vector.shape_cast %76 : vector<128x128xf32> to vector<8x16x128xf32>
    %c0_50 = arith.constant 0 : index
    %c0_51 = arith.constant 0 : index
    %c0_52 = arith.constant 0 : index
    %78 = vector.load %arg6[%c0_50, %c0_51, %c0_52] : memref<8x16x128xf32, #tpu.memory_space<vmem>>, vector<8x16x128xf32>
    tpu.vector_store %arg6[%c0_50, %c0_51, %c0_52], %77 {strides = array<i32>} : memref<8x16x128xf32, #tpu.memory_space<vmem>>, vector<8x16x128xf32>,
    return
  }
  func.func @transform_0(%arg0: i32) -> (i32, i32, i32) {
    %c0_i32 = arith.constant 0 : i32
    %c0_i32_0 = arith.constant 0 : i32
    %c0_i32_1 = arith.constant 0 : i32
    return %arg0, %c0_i32, %c0_i32_0 : i32, i32, i32
  }
  func.func @transform_1(%arg0: i32) -> (i32, i32) {
    %c0_i32 = arith.constant 0 : i32
    %c0_i32_0 = arith.constant 0 : i32
    %c0_i32_1 = arith.constant 0 : i32
    return %c0_i32, %c0_i32_0 : i32, i32
  }
  func.func @transform_2(%arg0: i32) -> (i32, i32) {
    %c0_i32 = arith.constant 0 : i32
    %c0_i32_0 = arith.constant 0 : i32
    %c0_i32_1 = arith.constant 0 : i32
    return %c0_i32, %c0_i32_0 : i32, i32
  }
  func.func @transform_3(%arg0: i32) -> (i32, i32) {
    %c0_i32 = arith.constant 0 : i32
    %c0_i32_0 = arith.constant 0 : i32
    %c0_i32_1 = arith.constant 0 : i32
    return %c0_i32, %c0_i32_0 : i32, i32
  }
  func.func @transform_4(%arg0: i32) -> (i32, i32) {
    %c0_i32 = arith.constant 0 : i32
    %c0_i32_0 = arith.constant 0 : i32
    %c0_i32_1 = arith.constant 0 : i32
    return %c0_i32, %c0_i32_0 : i32, i32
  }
  func.func @transform_5(%arg0: i32) -> (i32, i32, i32) {
    %c0_i32 = arith.constant 0 : i32
    %c0_i32_0 = arith.constant 0 : i32
    %c0_i32_1 = arith.constant 0 : i32
    return %arg0, %c0_i32, %c0_i32_0 : i32, i32, i32
  }
}

</mosaic_0001>

<bundles_post_ra>
// kernel: tpu_custom_call.1
= control target key start
LH: loop header
LB: loop body
LE: loop exit
PB: predicated region body
PF: predicated region fallthrough
CT: control target
= control target key end

     0   :  { %10 = vsyncpa [#allocation4], 0  ;;  %s3203_s0 = inlined_call_operand.hbm [shape: f32[16,16,64], index: 0, kind: input, shape index: {}]   ;;  %s3204_s1 = inlined_call_operand.hbm [shape: f32[9,64], index: 1, kind: input, shape index: {}]   ;;  %s3205_s2 = inlined_call_operand.vmem [shape: f32[1,64], index: 2, kind: input, shape index: {}]   ;;  %s3206_s3 = inlined_call_operand.hbm [shape: f32[64,128], index: 3, kind: input, shape index: {}]   ;;  %s3207_s4 = inlined_call_operand.vmem [shape: f32[1,128], index: 4, kind: input, shape index: {}]   ;;  %s3208_s5 = inlined_call_operand.hbm [shape: f32[16,16,128], index: 5, kind: output, shape index: {}]  }
   0x1   :  { %12 = vsyncpa [#allocation4 + $0x1], 0 }
   0x2   :  { %13 = vsyncpa [#allocation7], 0 }
   0x3   :  { %14 = vsyncpa [#allocation5], 0 }
   0x4   :  { %16 = vsyncpa [#allocation5 + $0x1], 0  ;;  %s2000_s18 = smov 0   ;;  %s2002_s19 = smov 0  }
   0x5   :  { %s2004_s20 = smov 0   ;;  %s2006_s21 = smov 0  }
   0x6 LB: > { %s2021_s22 = sadd.s32 4294967295, %s1956_s21   ;;  %s1594_s23 = sadd.s32 4294967294, %s1956_s21   ;;  %s1956_s21 = sphi %s2006_s21, %s3306_s21   ;;  %s1952_s20 = sphi %s2004_s20, %s3305_s20   ;;  %s1948_s19 = sphi %s2002_s19, %s3304_s19   ;;  %s1944_s18 = sphi %s2000_s18, %s3303_s18  }
   0x7   : > { %p42_p0 = scmp.ne.s32.totalorder %s1948_s19, %s1944_s18  ;;  %p3209_p1 = scmp.eq.s32.totalorder %s2021_s22, 0 }
   0x8   : > { %p156_p3 = scmp.eq.s32.totalorder %s1594_s23, 1  ;;  %p1595_p5 = scmp.ge.s32.totalorder %s1956_s21, 1 }
   0x9   : > { %p2030_p4 = por %p3209_p1, %p42_p0  ;;  %p163_p7 = scmp.lt.s32.totalorder %s1956_s21, 3 }
   0xa   : > { %p2035_p6 = por %p156_p3, %p42_p0  ;;  %s1958_s27 = smov [#allocation6]  }
   0xb   : > { %s3220_s24 = scalar_select %p2030_p4, 1, 0 }
   0xc   : > { %s3221_s25 = scalar_select %p2035_p6, 1, 0 }
   0xd   : > { %p2040_p8 = pnand %p1595_p5, %p163_p7  ;;  %s175_s28 = sshll.u32 %s1958_s27, 4  ;;  %s2044_s28 = int_to_ptr.vmem [resolvable:$true] %s175_s28 }
   0xe   : > { %s1959_s30 = smov [#allocation8]   ;;  %s1800_s9 = scalar_lea.hbm %s3204_s1, 256 }
   0xf   : > { %p1737_p9 = pneg %p2040_p8  ;;  %s191_s6 = sshll.u32 %s1959_s30, 4  ;;  %s2055_s6 = int_to_ptr.vmem [resolvable:$true] %s191_s6 }
  0x10   : > { %p1801_p12 = scmp.ne.s32.totalorder %s3204_s1, %s1800_s9  ;;  %p1807_p5 = scmp.lt.u32.totalorder %s1800_s9, %s3204_s1 }
  0x11   : > { %p2051_p11 = pnand %p1737_p9, %p3209_p1 }
  0x13   : > { %p1802_p13 = pneg %p2051_p11 }
  0x15   : > { %p1803_p0 = pnand %p1802_p13, %p1801_p12 }
  0x17   : > { %p1804_p3 = pneg %p1803_p0 }
  0x19   : > { %p1809_p7 = pnand %p1807_p5, %p1804_p3 }
  0x1b   : > { %1812 = shalt.err (!%p1809_p7)
}
  0x1c   : > { %s1813_s14 = scalar_lea.vmem %s2044_s28, 256  ;;  %p1821_p2 = scmp.lt.s32.totalorder %s2044_s28, %s2044_s28 }
  0x1d   : > { %p1814_p9 = scmp.ne.s32.totalorder %s2044_s28, %s1813_s14  ;;  %p1822_p12 = scmp.lt.s32.totalorder %s1813_s14, %s1813_s14 }
  0x1f   : > { %p1816_p10 = pnand %p1814_p9, %p1802_p13  ;;  %p1823_p0 = por %p1822_p12, %p1821_p2 }
  0x21   : > { %p1817_p1 = pneg %p1816_p10 }
  0x23   : > { %p1824_p6 = pnand %p1823_p0, %p1817_p1 }
  0x25   : > { %1827 = shalt.err (!%p1824_p6)
}
  0x26   : > { %s1960_s15 = smov 128   ;;  %s1961_s16 = smov 8  }
  0x27   : > { %1740 = dma.hbm_to_vmem [thread:$0]  (!%p2051_p11), %s3204_s1, 256, %s2044_s28, [#allocation7], %s1960_s15, %s1960_s15, %s1961_s16  }
  0x28   : > { %s1828_s7 = scalar_lea.hbm %s3206_s3, 1024 }
  0x29   : > { %p1829_p1 = scmp.ne.s32.totalorder %s3206_s3, %s1828_s7  ;;  %p1835_p10 = scmp.lt.u32.totalorder %s1828_s7, %s3206_s3 }
  0x2b   : > { %p1831_p2 = pnand %p1829_p1, %p1802_p13 }
  0x2d   : > { %p1832_p6 = pneg %p1831_p2 }
  0x2f   : > { %p1837_p3 = pnand %p1835_p10, %p1832_p6 }
  0x31   : > { %1840 = shalt.err (!%p1837_p3)
}
  0x32   : > { %s1841_s28 = scalar_lea.vmem %s2055_s6, 1024  ;;  %p1849_p12 = scmp.lt.s32.totalorder %s2055_s6, %s2055_s6 }
  0x33   : > { %p1842_p5 = scmp.ne.s32.totalorder %s2055_s6, %s1841_s28  ;;  %p1850_p0 = scmp.lt.s32.totalorder %s1841_s28, %s1841_s28 }
  0x35   : > { %p1844_p7 = pnand %p1842_p5, %p1802_p13  ;;  %p1851_p1 = por %p1850_p0, %p1849_p12 }
  0x37   : > { %p1845_p9 = pneg %p1844_p7 }
  0x39   : > { %p1852_p2 = pnand %p1851_p1, %p1845_p9 }
  0x3b   : > { %1855 = shalt.err (!%p1852_p2)
}
  0x3c   : > { %1743 = dma.hbm_to_vmem [thread:$0]  (!%p2051_p11), %s3206_s3, 1024, %s2055_s6, [#allocation7], %s1960_s15, %s1960_s15, %s1961_s16  }
  0x3d   : > { %s2116_s29 = sadd.s32 1, %s1956_s21   ;;  %s29_s14 = sadd.s32 1, %s1952_s20 }
  0x3e   : > { %s26_s17 = ssub.s32 %s1956_s21, %s2116_s29  ;;  %p36_p13 = scmp.ne.s32.totalorder %s1952_s20, %s1948_s19 }
  0x3f   : > { %p27_p6 = scmp.eq.s32.totalorder %s26_s17, 0  ;;  %p37_p10 = scmp.eq.s32.totalorder %s1956_s21, 0 }
  0x40   : > { %p3224_p3 = scmp.eq.s32.totalorder %s2021_s22, 1  ;;  %p1754_p7 = scmp.lt.s32.totalorder %s1956_s21, 2 }
  0x41   : > { %s2132_s27 = scalar_select %p27_p6, %s1952_s20, %s29_s14  }
  0x42   : > { %p2126_p5 = por %p3224_p3, %p36_p13  ;;  %p38_p9 = por %p37_p10, %p36_p13 }
  0x43   : > { %s208_s30 = sand.u32 1, %s1952_s20   ;;  %s1634_s6 = sshll.u32 %s1956_s21, 11 }
  0x44   : > { %s3225_s23 = scalar_select %p2126_p5, 1, 0 }
  0x45   : > { %s1599_s7 = sshll.u32 %s208_s30, 7  ;;  %s2139_s10 = scalar_lea.hbm %s3203_s0, %s1634_s6 }
  0x46   : > { %s212_s11 = scalar_lea.vmem [#allocation3], %s1599_s7  ;;  %p2143_p11 = pnand %p1754_p7, %p38_p9 }
  0x47   : > { %s220_s28 = sshll.u32 %s212_s11, 4  ;;  %s2147_s13 = scalar_lea.sflag [#allocation4], %s208_s30  ;;  %s2141_s28 = int_to_ptr.vmem [resolvable:$true] %s220_s28 }
  0x48   : > { %s1856_s14 = scalar_lea.hbm %s2139_s10, 2048  ;;  %p1858_p0 = pneg %p2143_p11 }
  0x49   : > { %p1857_p12 = scmp.ne.s32.totalorder %s2139_s10, %s1856_s14  ;;  %s1861_s6 = scalar_lea.hbm %s3203_s0, 4096 }
  0x4a   : > { %p1862_p13 = scmp.lt.u32.totalorder %s2139_s10, %s3203_s0  ;;  %p1863_p6 = scmp.lt.u32.totalorder %s1861_s6, %s1856_s14 }
  0x4b   : > { %p1859_p1 = pnand %p1858_p0, %p1857_p12  ;;  %p1865_p3 = scmp.lt.u32.totalorder %s1856_s14, %s2139_s10 }
  0x4c   : > { %p1864_p10 = por %p1863_p6, %p1862_p13 }
  0x4d   : > { %p1860_p2 = pneg %p1859_p1 }
  0x4e   : > { %p1866_p7 = por %p1865_p3, %p1864_p10 }
  0x50   : > { %p1867_p9 = pnand %p1866_p7, %p1860_p2 }
  0x52   : > { %1870 = shalt.err (!%p1867_p9)
}
  0x53   : > { %s1871_s30 = scalar_lea.vmem %s2141_s28, 2048  ;;  %s1962_s11 = smov [#allocation3]  }
  0x54   : > { %p1872_p12 = scmp.ne.s32.totalorder %s2141_s28, %s1871_s30  ;;  %s1876_s17 = sshll.u32 %s1962_s11, 4  ;;  %s1877_s17 = int_to_ptr.vmem [resolvable:$false] %s1876_s17 }
  0x55   : > { %s1878_s7 = scalar_lea.vmem %s1877_s17, 4096  ;;  %p1879_p4 = scmp.lt.s32.totalorder %s2141_s28, %s1877_s17 }
  0x56   : > { %p1874_p1 = pnand %p1872_p12, %p1858_p0  ;;  %p1880_p13 = scmp.lt.s32.totalorder %s1878_s7, %s1871_s30 }
  0x58   : > { %p1875_p5 = pneg %p1874_p1  ;;  %p1881_p6 = por %p1880_p13, %p1879_p4 }
  0x5a   : > { %p1882_p10 = pnand %p1881_p6, %p1875_p5 }
  0x5c   : > { %1885 = shalt.err (!%p1882_p10)
}
  0x5d   : > { %1747 = dma.hbm_to_vmem [thread:$0]  (!%p2143_p11), %s2139_s10, 2048, %s2141_s28, %s2147_s13, %s1960_s15, %s1960_s15, %s1961_s16  }
  0x5e   : > { %232 = sbr.rel (%p2040_p8) target bundleno = 786 (0x312), region = 40 }
  0x65   : > { %s2181_s14 = sand.u32 1, %s1948_s19   ;;  %p3227_p4 = scmp.ne.s32.totalorder %s3220_s24, 0 }
  0x66   : > { %s1604_s6 = sshll.u32 %s2181_s14, 7  ;;  %s235_s8 = scalar_lea.sflag [#allocation4], %s2181_s14 }
  0x67   : > { %s2187_s12 = scalar_lea.vmem [#allocation3], %s1604_s6 }
  0x68   : > { %1931 = dma.done.wait (%p3227_p4), %s235_s8, 2048  }
  0x69   : > { %1933 = vsyncadd (%p3227_p4), %s235_s8, 4294965248  ;;  %p3228_p5 = scmp.eq.s32.totalorder %s2021_s22, 0 }
  0x6b   : > { %1935 = dma.done.wait (%p3228_p5), [#allocation7], 1280   ;;  %p3229_p8 = pmov %p3228_p5 }
  0x6c   : > { %v466_v0 = vlaneseq  ;;  %vm291_vm0 = vcmask 581632   ;;  %v1963_v1 = vmov 0.0   ;;  %vm308_vm1 = vcmask 31744   ;;  %v276_v6 = vld [vmem:[%s2187_s12 + $0x8] sm:$0xff]  ;;  %v275_v7 = vld [vmem:[%s2187_s12] sm:$0xff]  ;;  %s1964_s24 = smov 4  }
  0x6d   : > { %1937 = vsyncadd (%p3229_p8), [#allocation7], 4294966016  ;;  %300 = vst.msk [vmem:[#allocation2 + $0x11] sm:$0x1] %vm291_vm0, %v1963_v1  ;;  %vm311_vm2 = vcmask 25600   ;;  %vm334_vm3 = vcmask 589344   ;;  %378 = vrot.lane.b32.xlu1 %v276_v6, %s1964_s24  ;;  %376 = vrot.lane.b32.xlu0 %v275_v7, %s1964_s24 }
  0x6e   : > { %vm337_vm4 = vcmask 583200   ;;  %292 = vst.msk [vmem:[#allocation2] sm:$0x1] %vm291_vm0, %v1963_v1  ;;  %293 = vst.msk [vmem:[#allocation2 + $0x18] sm:$0x1] %vm291_vm0, %v1963_v1  ;;  %v2277_v2 = vshrl.u32 %v466_v0, 7 }
  0x6f   : > { %294 = vst.msk [vmem:[#allocation2 + $0x30] sm:$0x1] %vm291_vm0, %v1963_v1  ;;  %295 = vst.msk [vmem:[#allocation2 + $0x48] sm:$0x1] %vm291_vm0, %v1963_v1  ;;  %v441_v8 = vld [vmem:[#allocation6] sm:$0xff]  ;;  %v284_v9 = vld [vmem:[%s2187_s12 + $0x48] sm:$0xff] }
  0x70   : > { %296 = vst.msk [vmem:[#allocation2 + $0x60] sm:$0x1] %vm291_vm0, %v1963_v1  ;;  %297 = vst.msk [vmem:[#allocation2 + $0x78] sm:$0x1] %vm291_vm0, %v1963_v1  ;;  %v468_v3 = vsub.s32 0, %v2277_v2  ;;  %v728_v4 = vsub.s32 3, %v2277_v2 }
  0x71   : > { %298 = vst.msk [vmem:[#allocation2 + $0x90] sm:$0x1] %vm291_vm0, %v1963_v1  ;;  %299 = vst.msk [vmem:[#allocation2 + $0xa8] sm:$0x1] %vm291_vm0, %v1963_v1  ;;  %v988_v5 = vsub.s32 6, %v2277_v2  ;;  %v283_v10 = vld [vmem:[%s2187_s12 + $0x40] sm:$0xff]  ;;  %394 = vrot.lane.b32.xlu1 %v284_v9, %s1964_s24 }
  0x72   : > { %301 = vst.msk [vmem:[#allocation2 + $0x29] sm:$0x1] %vm291_vm0, %v1963_v1  ;;  %302 = vst.msk [vmem:[#allocation2 + $0x41] sm:$0x1] %vm291_vm0, %v1963_v1  ;;  %v2336_v11 = vrot.slane %v441_v8, %v468_v3  ;;  %v2338_v12 = vrot.slane %v441_v8, %v728_v4  ;;  %392 = vrot.lane.b32.xlu0 %v283_v10, %s1964_s24  ;;  %v285_v14 = vld [vmem:[%s2187_s12 + $0x50] sm:$0xff]  ;;  %v286_v16 = vld [vmem:[%s2187_s12 + $0x58] sm:$0xff] }
  0x73   : > { %303 = vst.msk [vmem:[#allocation2 + $0x59] sm:$0x1] %vm291_vm0, %v1963_v1  ;;  %304 = vst.msk [vmem:[#allocation2 + $0x71] sm:$0x1] %vm291_vm0, %v1963_v1  ;;  %v2340_v13 = vrot.slane %v441_v8, %v988_v5  ;;  %v277_v15 = vld [vmem:[%s2187_s12 + $0x10] sm:$0xff]  ;;  %v278_v17 = vld [vmem:[%s2187_s12 + $0x18] sm:$0xff] }
  0x74   : > { %305 = vst.msk [vmem:[#allocation2 + $0x89] sm:$0x1] %vm291_vm0, %v1963_v1  ;;  %306 = vst.msk [vmem:[#allocation2 + $0xa1] sm:$0x1] %vm291_vm0, %v1963_v1  ;;  %v504_v18 = vsub.s32 1, %v2277_v2  ;;  %v287_v19 = vld [vmem:[%s2187_s12 + $0x60] sm:$0xff] }
  0x75   : > { %307 = vst.msk [vmem:[#allocation2 + $0xb9] sm:$0x1] %vm291_vm0, %v1963_v1  ;;  %396 = vrot.lane.b32.xlu1 %v285_v14, %s1964_s24  ;;  %v279_v20 = vld [vmem:[%s2187_s12 + $0x20] sm:$0xff]  ;;  %v608_v22 = vsub.s32 2, %v2277_v2  ;;  %v280_v23 = vld [vmem:[%s2187_s12 + $0x28] sm:$0xff]  ;;  %s1965_s26 = smov 8  }
  0x76   : > { %310 = vst.msk [vmem:[#allocation2 + $0x8] sm:$0xff] %vm308_vm1, %v1963_v1  ;;  %314 = vst.msk [vmem:[#allocation2 + $0x20] sm:$0xff] %vm308_vm1, %v1963_v1  ;;  %380 = vrot.lane.b32.xlu0 %v277_v15, %s1964_s24  ;;  %v505_v21 = vrot.slane %v441_v8, %v504_v18  ;;  %v288_v25 = vld [vmem:[%s2187_s12 + $0x68] sm:$0xff]  ;;  %v289_v26 = vld [vmem:[%s2187_s12 + $0x70] sm:$0xff]  ;;  %v868_v28 = vsub.s32 5, %v2277_v2  ;;  %v764_v29 = vsub.s32 4, %v2277_v2 }
  0x77   : > { %312 = vst.msk [vmem:[#allocation2 + $0x10] sm:$0x3] %vm311_vm2, %v1963_v1  ;;  %315 = vst.msk [vmem:[#allocation2 + $0x28] sm:$0x3] %vm311_vm2, %v1963_v1  ;;  %v609_v24 = vrot.slane %v441_v8, %v608_v22  ;;  %v281_v27 = vld [vmem:[%s2187_s12 + $0x30] sm:$0xff]  ;;  %v290_v30 = vld [vmem:[%s2187_s12 + $0x78] sm:$0xff] }
  0x78   : > { %317 = vst.msk [vmem:[#allocation2 + $0x38] sm:$0xff] %vm308_vm1, %v1963_v1  ;;  %320 = vst.msk [vmem:[#allocation2 + $0x50] sm:$0xff] %vm308_vm1, %v1963_v1  ;;  %v282_v31 = vld [vmem:[%s2187_s12 + $0x38] sm:$0xff]  ;;  %v869_v32 = vrot.slane %v441_v8, %v868_v28  ;;  %v765_v33 = vrot.slane %v441_v8, %v764_v29  ;;  %v1024_v34 = vsub.s32 7, %v2277_v2  ;;  %v1609_v36 = vld [vmem:[#allocation6 + $0x8] ss:$0 sm:$0xff] }
  0x79   : > { %323 = vst.msk [vmem:[#allocation2 + $0x68] sm:$0xff] %vm308_vm1, %v1963_v1  ;;  %326 = vst.msk [vmem:[#allocation2 + $0x80] sm:$0xff] %vm308_vm1, %v1963_v1  ;;  %398 = vrot.lane.b32.xlu1 %v286_v16, %s1964_s24  ;;  %vm424_vm5 = vcmask 556064   ;;  %s1966_s15 = smov 124   ;;  %s1967_s28 = smov 120   ;;  %vm1261_vm6 = vcmask 523264  }
  0x7a   : > { %329 = vst.msk [vmem:[#allocation2 + $0x98] sm:$0xff] %vm308_vm1, %v1963_v1  ;;  %332 = vst.msk [vmem:[#allocation2 + $0xb0] sm:$0xff] %vm308_vm1, %v1963_v1  ;;  %382 = vrot.lane.b32.xlu0 %v278_v17, %s1964_s24  ;;  %v1025_v35 = vrot.slane %v441_v8, %v1024_v34  ;;  %s3133_s30 = scalar_lea.vmem [#allocation9], %s1604_s6  ;;  %s1636_s11 = sshll.u32 %s2021_s22, 11 }
  0x7b   : > { %309 = vst.msk [vmem:[#allocation2] sm:$0xff] %vm308_vm1, %v1963_v1  ;;  %313 = vst.msk [vmem:[#allocation2 + $0x18] sm:$0xff] %vm308_vm1, %v1963_v1  ;;  %s1502_s17 = sshll.u32 %s3133_s30, 4  ;;  %s3152_s8 = scalar_lea.hbm %s3208_s5, %s1636_s11  ;;  %s3154_s17 = int_to_ptr.vmem [resolvable:$true] %s1502_s17 }
  0x7c   : > { %316 = vst.msk [vmem:[#allocation2 + $0x30] sm:$0xff] %vm308_vm1, %v1963_v1  ;;  %319 = vst.msk [vmem:[#allocation2 + $0x48] sm:$0xff] %vm308_vm1, %v1963_v1  ;;  %s1488_s22 = scalar_lea.sflag [#allocation5], %s2181_s14  ;;  %s1886_s12 = scalar_lea.vmem %s3154_s17, 2048 }
  0x7d   : > { %318 = vst.msk [vmem:[#allocation2 + $0x40] sm:$0x3] %vm311_vm2, %v1963_v1  ;;  %321 = vst.msk [vmem:[#allocation2 + $0x58] sm:$0x3] %vm311_vm2, %v1963_v1  ;;  %400 = vrot.lane.b32.xlu1 %v287_v19, %s1964_s24  ;;  %p1887_p11 = scmp.ne.s32.totalorder %s3154_s17, %s1886_s12  ;;  %p3300_p0 = scmp.ne.s32.totalorder %s3225_s23, 0 }
  0x7e   : > { %322 = vst.msk [vmem:[#allocation2 + $0x60] sm:$0xff] %vm308_vm1, %v1963_v1  ;;  %325 = vst.msk [vmem:[#allocation2 + $0x78] sm:$0xff] %vm308_vm1, %v1963_v1  ;;  %384 = vrot.lane.b32.xlu0 %v279_v20, %s1964_s24 }
  0x7f   : > { %324 = vst.msk [vmem:[#allocation2 + $0x70] sm:$0x3] %vm311_vm2, %v1963_v1  ;;  %327 = vst.msk [vmem:[#allocation2 + $0x88] sm:$0x3] %vm311_vm2, %v1963_v1  ;;  %p1888_p2 = pnand %p1887_p11, %p3300_p0 }
  0x80   : > { %328 = vst.msk [vmem:[#allocation2 + $0x90] sm:$0xff] %vm308_vm1, %v1963_v1  ;;  %331 = vst.msk [vmem:[#allocation2 + $0xa8] sm:$0xff] %vm308_vm1, %v1963_v1 }
  0x81   : > { %330 = vst.msk [vmem:[#allocation2 + $0xa0] sm:$0x3] %vm311_vm2, %v1963_v1  ;;  %333 = vst.msk [vmem:[#allocation2 + $0xb8] sm:$0x3] %vm311_vm2, %v1963_v1  ;;  %386 = vrot.lane.b32.xlu1 %v280_v23, %s1964_s24  ;;  %p1889_p3 = pneg %p1888_p2 }
  0x82   : > { %336 = vst.msk [vmem:[#allocation2 + $0x8] sm:$0xff] %vm334_vm3, %v1963_v1  ;;  %335 = vst.msk [vmem:[#allocation2] sm:$0xff] %vm334_vm3, %v1963_v1  ;;  %507 = vrot.lane.b32.xlu0 %v505_v21, %s1964_s24 }
  0x83   : > { %338 = vst.msk [vmem:[#allocation2 + $0x10] sm:$0x3] %vm337_vm4, %v1963_v1  ;;  %350 = vst.msk [vmem:[#allocation2 + $0x70] sm:$0x3] %vm337_vm4, %v1963_v1 }
  0x84   : > { %340 = vst.msk [vmem:[#allocation2 + $0x20] sm:$0xff] %vm334_vm3, %v1963_v1  ;;  %343 = vst.msk [vmem:[#allocation2 + $0x38] sm:$0xff] %vm334_vm3, %v1963_v1 }
  0x85   : > { %346 = vst.msk [vmem:[#allocation2 + $0x50] sm:$0xff] %vm334_vm3, %v1963_v1  ;;  %349 = vst.msk [vmem:[#allocation2 + $0x68] sm:$0xff] %vm334_vm3, %v1963_v1  ;;  %611 = vrot.lane.b32.xlu1 %v609_v24, %s1965_s26 }
  0x86   : > { %352 = vst.msk [vmem:[#allocation2 + $0x80] sm:$0xff] %vm334_vm3, %v1963_v1  ;;  %355 = vst.msk [vmem:[#allocation2 + $0x98] sm:$0xff] %vm334_vm3, %v1963_v1  ;;  %402 = vrot.lane.b32.xlu0 %v288_v25, %s1964_s24 }
  0x87   : > { %358 = vst.msk [vmem:[#allocation2 + $0xb0] sm:$0xff] %vm334_vm3, %v1963_v1  ;;  %339 = vst.msk [vmem:[#allocation2 + $0x18] sm:$0xff] %vm334_vm3, %v1963_v1 }
  0x88   : > { %341 = vst.msk [vmem:[#allocation2 + $0x28] sm:$0x3] %vm337_vm4, %v1963_v1  ;;  %344 = vst.msk [vmem:[#allocation2 + $0x40] sm:$0x3] %vm337_vm4, %v1963_v1 }
  0x89   : > { %342 = vst.msk [vmem:[#allocation2 + $0x30] sm:$0xff] %vm334_vm3, %v1963_v1  ;;  %345 = vst.msk [vmem:[#allocation2 + $0x48] sm:$0xff] %vm334_vm3, %v1963_v1  ;;  %404 = vrot.lane.b32.xlu1 %v289_v26, %s1964_s24 }
  0x8a   : > { %347 = vst.msk [vmem:[#allocation2 + $0x58] sm:$0x3] %vm337_vm4, %v1963_v1  ;;  %353 = vst.msk [vmem:[#allocation2 + $0x88] sm:$0x3] %vm337_vm4, %v1963_v1  ;;  %388 = vrot.lane.b32.xlu0 %v281_v27, %s1964_s24 }
  0x8b   : > { %348 = vst.msk [vmem:[#allocation2 + $0x60] sm:$0xff] %vm334_vm3, %v1963_v1  ;;  %351 = vst.msk [vmem:[#allocation2 + $0x78] sm:$0xff] %vm334_vm3, %v1963_v1 }
  0x8c   : > { %354 = vst.msk [vmem:[#allocation2 + $0x90] sm:$0xff] %vm334_vm3, %v1963_v1  ;;  %357 = vst.msk [vmem:[#allocation2 + $0xa8] sm:$0xff] %vm334_vm3, %v1963_v1 }
  0x8d   : > { %356 = vst.msk [vmem:[#allocation2 + $0xa0] sm:$0x3] %vm337_vm4, %v1963_v1  ;;  %359 = vst.msk [vmem:[#allocation2 + $0xb8] sm:$0x3] %vm337_vm4, %v1963_v1  ;;  %406 = vrot.lane.b32.xlu1 %v290_v30, %s1964_s24 }
  0x8e   : > { %390 = vrot.lane.b32.xlu0 %v282_v31, %s1964_s24 }
  0x91   : > { %871 = vrot.lane.b32.xlu1 %v869_v32, %s1965_s26 }
  0x92   : > { %767 = vrot.lane.b32.xlu0 %v765_v33, %s1964_s24 }
  0x95   : > { %1131 = vrot.lane.b32.xlu1 %v1609_v36, %s1965_s26 }
  0x96   : > { %1027 = vrot.lane.b32.xlu0 %v1025_v35, %s1964_s24  ;;  %s1968_s24 = smov [#allocation9]  }
  0xdf   : > { %v379_v37 = vpop.permute.xlu1 %378  ;;  %v377_v38 = vpop.permute.xlu0 %376 }
  0xe0   : > { %426 = vst.msk [vmem:[#allocation2 + $0x9] sm:$0xff] %vm424_vm5, %v379_v37  ;;  %425 = vst.msk [vmem:[#allocation2 + $0x1] sm:$0xff] %vm424_vm5, %v377_v38 }
  0xe3   : > { %v395_v39 = vpop.permute.xlu1 %394 }
  0xe4   : > { %v393_v40 = vpop.permute.xlu0 %392  ;;  %434 = vst.msk [vmem:[#allocation2 + $0x69] sm:$0xff] %vm424_vm5, %v395_v39 }
  0xe5   : > { %433 = vst.msk [vmem:[#allocation2 + $0x61] sm:$0xff] %vm424_vm5, %v393_v40 }
  0xe7   : > { %v397_v41 = vpop.permute.xlu1 %396  ;;  %v2383_v43 = vld [vmem:[#allocation2] sm:$0xff]  ;;  %v2385_v44 = vld [vmem:[#allocation2 + $0x8] sm:$0xff] }
  0xe8   : > { %v381_v42 = vpop.permute.xlu0 %380  ;;  %v2387_v45 = vld [vmem:[#allocation2 + $0x1] sm:$0xff]  ;;  %435 = vst.msk [vmem:[#allocation2 + $0x79] sm:$0xff] %vm424_vm5, %v397_v41  ;;  %v2391_v46 = vld [vmem:[#allocation2 + $0x9] sm:$0xff]  ;;  %v2399_v49 = vmul.f32 %v2336_v11, %v2383_v43  ;;  %v2403_v50 = vmul.f32 %v2336_v11, %v2385_v44 }
  0xe9   : > { %427 = vst.msk [vmem:[#allocation2 + $0x19] sm:$0xff] %vm424_vm5, %v381_v42  ;;  %v2393_v47 = vld [vmem:[#allocation2 + $0x2] sm:$0xff]  ;;  %v2395_v48 = vld [vmem:[#allocation2 + $0xa] sm:$0xff]  ;;  %v2407_v51 = vmul.f32 %v2338_v12, %v2387_v45  ;;  %v2411_v52 = vmul.f32 %v2338_v12, %v2391_v46 }
  0xea   : > { %v2415_v53 = vmul.f32 %v2340_v13, %v2393_v47  ;;  %v2419_v54 = vmul.f32 %v2340_v13, %v2395_v48 }
  0xeb   : > { %v399_v55 = vpop.permute.xlu1 %398  ;;  %v2429_v60 = vld [vmem:[#allocation2 + $0x69] sm:$0xff] }
  0xec   : > { %3230 = vst [vmem:[#allocation13_spill] sm:$0xff] %v2415_v53  ;;  %3231 = vst [vmem:[#allocation14_spill] sm:$0xff] %v2419_v54  ;;  %v383_v56 = vpop.permute.xlu0 %382  ;;  %v2421_v57 = vld [vmem:[#allocation2 + $0x60] sm:$0xff]  ;;  %v2423_v58 = vld [vmem:[#allocation2 + $0x68] sm:$0xff]  ;;  %v2449_v2 = vmul.f32 %v2338_v12, %v2429_v60 }
  0xed   : > { %v2425_v59 = vld [vmem:[#allocation2 + $0x61] sm:$0xff]  ;;  %436 = vst.msk [vmem:[#allocation2 + $0x81] sm:$0xff] %vm424_vm5, %v399_v55  ;;  %428 = vst.msk [vmem:[#allocation2 + $0x21] sm:$0xff] %vm424_vm5, %v383_v56  ;;  %v2433_v62 = vld [vmem:[#allocation2 + $0x6a] sm:$0xff]  ;;  %v2437_v63 = vmul.f32 %v2336_v11, %v2421_v57  ;;  %v2441_v0 = vmul.f32 %v2336_v11, %v2423_v58 }
  0xee   : > { %v2431_v61 = vld [vmem:[#allocation2 + $0x62] sm:$0xff]  ;;  %v2445_v1 = vmul.f32 %v2338_v12, %v2425_v59  ;;  %v2457_v4 = vmul.f32 %v2340_v13, %v2433_v62 }
  0xef   : > { %v2453_v3 = vmul.f32 %v2340_v13, %v2431_v61  ;;  %v401_v5 = vpop.permute.xlu1 %400  ;;  %v2459_v7 = vld [vmem:[#allocation2 + $0x78] sm:$0xff] }
  0xf0   : > { %3233 = vst [vmem:[#allocation16_spill] sm:$0xff] %v2457_v4  ;;  %v385_v6 = vpop.permute.xlu0 %384  ;;  %v2461_v8 = vld [vmem:[#allocation2 + $0x18] sm:$0xff]  ;;  %437 = vst.msk [vmem:[#allocation2 + $0x91] sm:$0xff] %vm424_vm5, %v401_v5  ;;  %v2471_v14 = vmul.f32 %v2336_v11, %v2459_v7 }
  0xf1   : > { %3232 = vst [vmem:[#allocation15_spill] sm:$0xff] %v2453_v3  ;;  %v2463_v9 = vld [vmem:[#allocation2 + $0x79] sm:$0xff]  ;;  %429 = vst.msk [vmem:[#allocation2 + $0x31] sm:$0xff] %vm424_vm5, %v385_v6  ;;  %v2475_v15 = vmul.f32 %v2336_v11, %v2461_v8 }
  0xf2   : > { %v2467_v10 = vld [vmem:[#allocation2 + $0x19] sm:$0xff]  ;;  %v2479_v16 = vmul.f32 %v2338_v12, %v2463_v9 }
  0xf3   : > { %v2483_v17 = vmul.f32 %v2338_v12, %v2467_v10  ;;  %v387_v18 = vpop.permute.xlu1 %386 }
  0xf4   : > { %3234 = vst [vmem:[#allocation17_spill] sm:$0xff] %v2479_v16  ;;  %v2485_v19 = vpop.permute.xlu0 %507  ;;  %v2487_v20 = vld [vmem:[#allocation2 + $0x80] sm:$0xff]  ;;  %430 = vst.msk [vmem:[#allocation2 + $0x39] sm:$0xff] %vm424_vm5, %v387_v18 }
  0xf5   : > { %3235 = vst [vmem:[#allocation18_spill] sm:$0xff] %v2483_v17  ;;  %v2489_v21 = vld [vmem:[#allocation2 + $0x20] sm:$0xff]  ;;  %v518_v23 = vmul.f32 %v2485_v19, %v2421_v57  ;;  %v510_v24 = vmul.f32 %v2485_v19, %v2383_v43  ;;  %v2510_v29 = vmul.f32 %v2336_v11, %v2487_v20  ;;  %v519_v38 = vmul.f32 %v2485_v19, %v2423_v58 }
  0xf6   : > { %v2491_v22 = vld [vmem:[#allocation2 + $0x81] sm:$0xff]  ;;  %v2514_v30 = vmul.f32 %v2336_v11, %v2489_v21  ;;  %v511_v39 = vmul.f32 %v2485_v19, %v2385_v44 }
  0xf7   : > { %v2498_v25 = vld [vmem:[#allocation2 + $0x21] sm:$0xff]  ;;  %558 = vrot.lane.b32.xlu1 %v518_v23, %s1966_s15  ;;  %542 = vrot.lane.b32.xlu0 %v510_v24, %s1966_s15  ;;  %3236 = vst [vmem:[#allocation19_spill] sm:$0xff] %v2510_v29  ;;  %v2518_v31 = vmul.f32 %v2338_v12, %v2491_v22  ;;  %v2520_v32 = vpop.permute.xlu1 %611  ;;  %v2547_v41 = vld [vmem:[#allocation2 + $0x90] sm:$0xff] }
  0xf8   : > { %v2500_v26 = vld [vmem:[#allocation2 + $0x7a] sm:$0xff]  ;;  %v2504_v28 = vld [vmem:[#allocation2 + $0x82] sm:$0xff]  ;;  %3237 = vst [vmem:[#allocation20_spill] sm:$0xff] %v2514_v30  ;;  %v403_v33 = vpop.permute.xlu0 %402  ;;  %v2524_v34 = vmul.f32 %v2338_v12, %v2498_v25  ;;  %v2543_v40 = vld [vmem:[#allocation2 + $0x30] sm:$0xff]  ;;  %v482_v24 = vmul.f32 %v2336_v11, %v2547_v41 }
  0xf9   : > { %v2502_v27 = vld [vmem:[#allocation2 + $0x1a] sm:$0xff]  ;;  %3238 = vst [vmem:[#allocation21_spill] sm:$0xff] %v2518_v31  ;;  %v2528_v35 = vmul.f32 %v2340_v13, %v2500_v26  ;;  %v2536_v37 = vmul.f32 %v2340_v13, %v2504_v28  ;;  %438 = vst.msk [vmem:[#allocation2 + $0x99] sm:$0xff] %vm424_vm5, %v403_v33  ;;  %v2549_v42 = vld [vmem:[#allocation2 + $0x91] sm:$0xff]  ;;  %v622_v33 = vmul.f32 %v2520_v32, %v2421_v57 }
  0xfa   : > { %3239 = vst [vmem:[#allocation22_spill] sm:$0xff] %v2524_v34  ;;  %v2532_v36 = vmul.f32 %v2340_v13, %v2502_v27  ;;  %v2551_v55 = vld [vmem:[#allocation2 + $0x31] sm:$0xff]  ;;  %v2557_v23 = vld [vmem:[#allocation2 + $0x22] sm:$0xff] }
  0xfb   : > { %3240 = vst [vmem:[#allocation23_spill] sm:$0xff] %v2528_v35  ;;  %3242 = vst [vmem:[#allocation25_spill] sm:$0xff] %v2536_v37  ;;  %560 = vrot.lane.b32.xlu1 %v519_v38, %s1966_s15  ;;  %544 = vrot.lane.b32.xlu0 %v511_v39, %s1966_s15  ;;  %v405_v56 = vpop.permute.xlu1 %404  ;;  %v2553_v6 = vld [vmem:[#allocation2 + $0x38] sm:$0xff]  ;;  %v614_v38 = vmul.f32 %v2520_v32, %v2383_v43  ;;  %v2570_v39 = vld [vmem:[%s3205_s2] ss:$0 sm:$0xff]  ;;  %v474_v37 = vmul.f32 %v2336_v11, %v2543_v40 }
  0xfc   : > { %3241 = vst [vmem:[#allocation24_spill] sm:$0xff] %v2532_v36  ;;  %v389_v5 = vpop.permute.xlu0 %388  ;;  %v2555_v18 = vld [vmem:[#allocation2 + $0x39] sm:$0xff]  ;;  %439 = vst.msk [vmem:[#allocation2 + $0xa9] sm:$0xff] %vm424_vm5, %v405_v56  ;;  %v475_v56 = vmul.f32 %v2336_v11, %v2553_v6  ;;  %v2581_v57 = vadd.f32 %v2570_v39, %v482_v24  ;;  %v2585_v43 = vmul.f32 %v2338_v12, %v2549_v42 }
  0xfd   : > { %431 = vst.msk [vmem:[#allocation2 + $0x49] sm:$0xff] %vm424_vm5, %v389_v5  ;;  %v2574_v36 = vld [vmem:[#allocation2 + $0x32] sm:$0xff]  ;;  %v2578_v5 = vld [vmem:[#allocation2 + $0x3a] sm:$0xff]  ;;  %v2589_v35 = vmul.f32 %v2338_v12, %v2551_v55  ;;  %v2593_v54 = vmul.f32 %v2338_v12, %v2555_v18  ;;  %v2598_v24 = vadd.f32 %v2570_v39, %v474_v37 }
  0xfe   : > { %3243 = vst [vmem:[#allocation26_spill] sm:$0xff] %v2574_v36  ;;  %3244 = vst [vmem:[#allocation27_spill] sm:$0xff] %v2578_v5  ;;  %v2601_v4 = vadd.f32 %v2570_v39, %v475_v56  ;;  %v2619_v37 = vmul.f32 %v2340_v13, %v2578_v5  ;;  %v615_v56 = vmul.f32 %v2520_v32, %v2385_v44 }
  0xff   : > { %3245 = vst [vmem:[#allocation28_spill] sm:$0xff] %v2581_v57  ;;  %3246 = vst [vmem:[#allocation29_spill] sm:$0xff] %v2585_v43  ;;  %662 = vrot.lane.b32.xlu1 %v622_v33, %s1967_s28  ;;  %646 = vrot.lane.b32.xlu0 %v614_v38, %s1967_s28  ;;  %v2605_v43 = vmul.f32 %v2340_v13, %v2557_v23  ;;  %v2615_v33 = vmul.f32 %v2340_v13, %v2574_v36 }
 0x100   : > { %3247 = vst [vmem:[#allocation30_spill] sm:$0xff] %v2589_v35  ;;  %3248 = vst [vmem:[#allocation31_spill] sm:$0xff] %v2593_v54  ;;  %v407_v35 = vpop.permute.xlu1 %406  ;;  %v391_v53 = vpop.permute.xlu0 %390  ;;  %v2607_v3 = vld [vmem:[#allocation2 + $0x98] sm:$0xff]  ;;  %v623_v38 = vmul.f32 %v2520_v32, %v2423_v58  ;;  %v520_v58 = vmul.f32 %v2485_v19, %v2459_v7 }
 0x101   : > { %3249 = vst [vmem:[#allocation32_spill] sm:$0xff] %v2598_v24  ;;  %3250 = vst [vmem:[#allocation33_spill] sm:$0xff] %v2601_v4  ;;  %v2609_v54 = vld [vmem:[#allocation2 + $0x99] sm:$0xff] }
 0x102   : > { %3251 = vst [vmem:[#allocation34_spill] sm:$0xff] %v2605_v43  ;;  %v2611_v57 = vld [vmem:[#allocation2 + $0x92] sm:$0xff]  ;;  %3253 = vst [vmem:[#allocation36_spill] sm:$0xff] %v2615_v33  ;;  %v483_v43 = vmul.f32 %v2336_v11, %v2607_v3  ;;  %v2629_v4 = vld [vmem:[#allocation2 + $0x9a] sm:$0xff]  ;;  %v2633_v33 = vmul.f32 %v2338_v12, %v2609_v54 }
 0x103   : > { %3252 = vst [vmem:[#allocation35_spill] sm:$0xff] %v2611_v57  ;;  %3254 = vst [vmem:[#allocation37_spill] sm:$0xff] %v2619_v37  ;;  %664 = vrot.lane.b32.xlu1 %v623_v38, %s1967_s28  ;;  %648 = vrot.lane.b32.xlu0 %v615_v56, %s1967_s28  ;;  %v512_v37 = vmul.f32 %v2485_v19, %v2461_v8  ;;  %v513_v38 = vmul.f32 %v2485_v19, %v2489_v21 }
 0x104   : > { %440 = vst.msk [vmem:[#allocation2 + $0xb1] sm:$0xff] %vm424_vm5, %v407_v35  ;;  %432 = vst.msk [vmem:[#allocation2 + $0x51] sm:$0xff] %vm424_vm5, %v391_v53  ;;  %v2637_v35 = vmul.f32 %v2340_v13, %v2611_v57  ;;  %v2641_v53 = vmul.f32 %v2340_v13, %v2629_v4  ;;  %v2646_v44 = vadd.f32 %v2570_v39, %v483_v43 }
 0x105   : > { %3255 = vst [vmem:[#allocation38_spill] sm:$0xff] %v2629_v4  ;;  %3256 = vst [vmem:[#allocation39_spill] sm:$0xff] %v2633_v33  ;;  %v624_v43 = vmul.f32 %v2520_v32, %v2459_v7  ;;  %v616_v56 = vmul.f32 %v2520_v32, %v2461_v8  ;;  %v625_v7 = vmul.f32 %v2520_v32, %v2487_v20 }
 0x106   : > { %3257 = vst [vmem:[#allocation40_spill] sm:$0xff] %v2637_v35  ;;  %3258 = vst [vmem:[#allocation41_spill] sm:$0xff] %v2641_v53  ;;  %v521_v53 = vmul.f32 %v2485_v19, %v2487_v20  ;;  %v2664_v35 = vpop.permute.xlu0 %767  ;;  %v617_v8 = vmul.f32 %v2520_v32, %v2489_v21 }
 0x107   : > { %3259 = vst [vmem:[#allocation42_spill] sm:$0xff] %v2646_v44  ;;  %562 = vrot.lane.b32.xlu1 %v520_v58, %s1966_s15  ;;  %546 = vrot.lane.b32.xlu0 %v512_v37, %s1966_s15  ;;  %v778_v37 = vmul.f32 %v2664_v35, %v2425_v59  ;;  %v2678_v58 = vld [vmem:[#allocation2 + $0xa8] sm:$0xff]  ;;  %v779_v21 = vmul.f32 %v2664_v35, %v2429_v60 }
 0x108   : > { %v484_v20 = vmul.f32 %v2336_v11, %v2678_v58  ;;  %v771_v33 = vmul.f32 %v2664_v35, %v2391_v46 }
 0x10a   : > { %v2715_v34 = vadd.f32 %v2570_v39, %v484_v20 }
 0x10b   : > { %564 = vrot.lane.b32.xlu1 %v521_v53, %s1966_s15  ;;  %548 = vrot.lane.b32.xlu0 %v513_v38, %s1966_s15  ;;  %v770_v53 = vmul.f32 %v2664_v35, %v2387_v45  ;;  %v2680_v38 = vld [vmem:[#allocation2 + $0x48] sm:$0xff]  ;;  %v2698_v44 = vld [vmem:[#allocation2 + $0xb1] sm:$0xff] }
 0x10c   : > { %v476_v5 = vmul.f32 %v2336_v11, %v2680_v38  ;;  %v2708_v24 = vld [vmem:[#allocation2 + $0x51] sm:$0xff]  ;;  %v2735_v20 = vmul.f32 %v2338_v12, %v2698_v44 }
 0x10d   : > { %v2710_v36 = vld [vmem:[#allocation2 + $0xb2] sm:$0xff] }
 0x10e   : > { %v2712_v57 = vld [vmem:[#allocation2 + $0x52] sm:$0xff]  ;;  %v2728_v30 = vadd.f32 %v2570_v39, %v476_v5  ;;  %3261 = vst [vmem:[#allocation44_spill] sm:$0xff] %v2735_v20  ;;  %v2756_v20 = vmul.f32 %v2340_v13, %v2710_v36 }
 0x10f   : > { %666 = vrot.lane.b32.xlu1 %v624_v43, %s1967_s28  ;;  %650 = vrot.lane.b32.xlu0 %v616_v56, %s1967_s28  ;;  %v2682_v43 = vld [vmem:[#allocation2 + $0x49] sm:$0xff] }
 0x110   : > { %v2686_v56 = vld [vmem:[#allocation2 + $0xb0] sm:$0xff]  ;;  %v2725_v16 = vmul.f32 %v2338_v12, %v2682_v43  ;;  %3263 = vst [vmem:[#allocation46_spill] sm:$0xff] %v2756_v20 }
 0x111   : > { %v485_v4 = vmul.f32 %v2336_v11, %v2686_v56 }
 0x112   : > { %3260 = vst [vmem:[#allocation43_spill] sm:$0xff] %v2725_v16 }
 0x113   : > { %818 = vrot.lane.b32.xlu1 %v778_v37, %s1966_s15  ;;  %802 = vrot.lane.b32.xlu0 %v770_v53, %s1966_s15  ;;  %v2688_v37 = vld [vmem:[#allocation2 + $0x50] sm:$0xff]  ;;  %v2731_v29 = vadd.f32 %v2570_v39, %v485_v4 }
 0x114   : > { %v2690_v53 = vld [vmem:[#allocation2 + $0xa9] sm:$0xff]  ;;  %v477_v31 = vmul.f32 %v2336_v11, %v2688_v37  ;;  %v2739_v11 = vmul.f32 %v2338_v12, %v2708_v24 }
 0x115   : > { %v2721_v17 = vmul.f32 %v2338_v12, %v2690_v53  ;;  %v2760_v12 = vmul.f32 %v2340_v13, %v2712_v57 }
 0x116   : > { %v2744_v16 = vadd.f32 %v2570_v39, %v477_v31  ;;  %v522_v31 = vmul.f32 %v2485_v19, %v2547_v41 }
 0x117   : > { %668 = vrot.lane.b32.xlu1 %v625_v7, %s1967_s28  ;;  %652 = vrot.lane.b32.xlu0 %v617_v8, %s1967_s28  ;;  %v2700_v7 = vld [vmem:[#allocation2 + $0xaa] sm:$0xff]  ;;  %3264 = vst [vmem:[#allocation47_spill] sm:$0xff] %v2760_v12  ;;  %v515_v12 = vmul.f32 %v2485_v19, %v2553_v6 }
 0x118   : > { %v2702_v8 = vld [vmem:[#allocation2 + $0x4a] sm:$0xff]  ;;  %v2748_v5 = vmul.f32 %v2340_v13, %v2700_v7 }
 0x119   : > { %v2752_v4 = vmul.f32 %v2340_v13, %v2702_v8  ;;  %v523_v13 = vmul.f32 %v2485_v19, %v2607_v3 }
 0x11b   : > { %820 = vrot.lane.b32.xlu1 %v779_v21, %s1966_s15  ;;  %804 = vrot.lane.b32.xlu0 %v771_v33, %s1966_s15  ;;  %3262 = vst [vmem:[#allocation45_spill] sm:$0xff] %v2752_v4  ;;  %v514_v33 = vmul.f32 %v2485_v19, %v2543_v40  ;;  %v2766_v21 = vpop.permute.xlu1 %871 }
 0x11c   : > { %v882_v4 = vmul.f32 %v2766_v21, %v2425_v59  ;;  %v874_v20 = vmul.f32 %v2766_v21, %v2387_v45  ;;  %v883_v59 = vmul.f32 %v2766_v21, %v2429_v60  ;;  %v875_v45 = vmul.f32 %v2766_v21, %v2391_v46 }
 0x11d   : > { %v780_v60 = vmul.f32 %v2664_v35, %v2463_v9  ;;  %v772_v46 = vmul.f32 %v2664_v35, %v2467_v10 }
 0x11f   : > { %566 = vrot.lane.b32.xlu1 %v522_v31, %s1966_s15  ;;  %550 = vrot.lane.b32.xlu0 %v514_v33, %s1966_s15  ;;  %v773_v31 = vmul.f32 %v2664_v35, %v2498_v25  ;;  %v884_v33 = vmul.f32 %v2766_v21, %v2463_v9  ;;  %v525_v9 = vmul.f32 %v2485_v19, %v2686_v56 }
 0x123   : > { %922 = vrot.lane.b32.xlu1 %v882_v4, %s1967_s28  ;;  %906 = vrot.lane.b32.xlu0 %v874_v20, %s1967_s28  ;;  %v626_v20 = vmul.f32 %v2520_v32, %v2547_v41  ;;  %v618_v4 = vmul.f32 %v2520_v32, %v2543_v40  ;;  %v627_v41 = vmul.f32 %v2520_v32, %v2607_v3 }
 0x124   : > { %v619_v40 = vmul.f32 %v2520_v32, %v2553_v6  ;;  %v524_v3 = vmul.f32 %v2485_v19, %v2678_v58  ;;  %v516_v6 = vmul.f32 %v2485_v19, %v2680_v38 }
 0x127   : > { %568 = vrot.lane.b32.xlu1 %v523_v13, %s1966_s15  ;;  %552 = vrot.lane.b32.xlu0 %v515_v12, %s1966_s15  ;;  %v781_v12 = vmul.f32 %v2664_v35, %v2491_v22  ;;  %v876_v13 = vmul.f32 %v2766_v21, %v2467_v10  ;;  %v517_v10 = vmul.f32 %v2485_v19, %v2688_v37 }
 0x12b   : > { %924 = vrot.lane.b32.xlu1 %v883_v59, %s1967_s28  ;;  %908 = vrot.lane.b32.xlu0 %v875_v45, %s1967_s28  ;;  %v2822_v59 = vpop.permute.xlu0 %1027 }
 0x12c   : > { %v1038_v45 = vmul.f32 %v2822_v59, %v2431_v61  ;;  %v1031_v19 = vmul.f32 %v2822_v59, %v2395_v48 }
 0x12f   : > { %670 = vrot.lane.b32.xlu1 %v626_v20, %s1967_s28  ;;  %654 = vrot.lane.b32.xlu0 %v618_v4, %s1967_s28  ;;  %v1030_v20 = vmul.f32 %v2822_v59, %v2393_v47  ;;  %v885_v4 = vmul.f32 %v2766_v21, %v2491_v22  ;;  %v628_v22 = vmul.f32 %v2520_v32, %v2678_v58  ;;  %v2860_v58 = vpop.permute.xlu1 %1131 }
 0x133   : > { %822 = vrot.lane.b32.xlu1 %v780_v60, %s1966_s15  ;;  %806 = vrot.lane.b32.xlu0 %v772_v46, %s1966_s15  ;;  %v877_v60 = vmul.f32 %v2766_v21, %v2498_v25  ;;  %v1039_v46 = vmul.f32 %v2822_v59, %v2433_v62  ;;  %v620_v25 = vmul.f32 %v2520_v32, %v2680_v38  ;;  %v1250_v38 = vld [vmem:[#allocation8 + $0x20] sm:$0xff] }
 0x137   : > { %672 = vrot.lane.b32.xlu1 %v627_v41, %s1967_s28  ;;  %656 = vrot.lane.b32.xlu0 %v619_v40, %s1967_s28  ;;  %v1246_v41 = vld [vmem:[#allocation8] sm:$0xff]  ;;  %v1247_v40 = vld [vmem:[#allocation8 + $0x8] sm:$0xff] }
 0x13b   : > { %824 = vrot.lane.b32.xlu1 %v781_v12, %s1966_s15  ;;  %808 = vrot.lane.b32.xlu0 %v773_v31, %s1966_s15  ;;  %v1701_v12 = vpack.c.bf16 %v1247_v40, %v1246_v41  ;;  %v1248_v31 = vld [vmem:[#allocation8 + $0x10] sm:$0xff]  ;;  %v775_v41 = vmul.f32 %v2664_v35, %v2555_v18 }
 0x13d   : > { %1702 = vmatprep.subr.bf16.mxu0 %v1701_v12  ;;  %1717 = vmatprep.subr.bf16.mxu1 %v1701_v12 }
 0x13e   : > { %1704 = vmatpush3.bf16.msra.mxu0 %v1701_v12  ;;  %1721 = vmatpush3.bf16.msra.mxu1 %v1701_v12 }
 0x13f   : > { %570 = vrot.lane.b32.xlu1 %v524_v3, %s1966_s15  ;;  %554 = vrot.lane.b32.xlu0 %v516_v6, %s1966_s15  ;;  %v1249_v3 = vld [vmem:[#allocation8 + $0x18] sm:$0xff] }
 0x140   : > { %v1705_v6 = vpack.c.bf16 %v1249_v3, %v1248_v31 }
 0x142   : > { %1706 = vmatprep.subr.bf16.mxu0 %v1705_v6  ;;  %1718 = vmatprep.subr.bf16.mxu1 %v1705_v6 }
 0x143   : > { %926 = vrot.lane.b32.xlu1 %v884_v33, %s1967_s28  ;;  %910 = vrot.lane.b32.xlu0 %v876_v13, %s1967_s28  ;;  %v782_v33 = vmul.f32 %v2664_v35, %v2549_v42  ;;  %v774_v13 = vmul.f32 %v2664_v35, %v2551_v55 }
 0x144   : > { %1708 = vmatpush3.bf16.msra.mxu0 %v1705_v6  ;;  %1722 = vmatpush3.bf16.msra.mxu1 %v1705_v6 }
 0x147   : > { %1078 = vrot.lane.b32.xlu1 %v1038_v45, %s1966_s15  ;;  %1062 = vrot.lane.b32.xlu0 %v1030_v20, %s1966_s15  ;;  %v1251_v45 = vld [vmem:[#allocation8 + $0x28] sm:$0xff] }
 0x148   : > { %v1709_v20 = vpack.c.bf16 %v1251_v45, %v1250_v38 }
 0x14a   : > { %1710 = vmatprep.subr.bf16.mxu0 %v1709_v20  ;;  %1719 = vmatprep.subr.bf16.mxu1 %v1709_v20 }
 0x14b   : > { %572 = vrot.lane.b32.xlu1 %v525_v9, %s1966_s15  ;;  %556 = vrot.lane.b32.xlu0 %v517_v10, %s1966_s15  ;;  %v1142_v9 = vmul.f32 %v2860_v58, %v2431_v61  ;;  %v1134_v10 = vmul.f32 %v2860_v58, %v2393_v47  ;;  %v783_v47 = vmul.f32 %v2664_v35, %v2609_v54 }
 0x14c   : > { %1712 = vmatpush3.bf16.msra.mxu0 %v1709_v20  ;;  %1723 = vmatpush3.bf16.msra.mxu1 %v1709_v20 }
 0x14f   : > { %928 = vrot.lane.b32.xlu1 %v885_v4, %s1967_s28  ;;  %912 = vrot.lane.b32.xlu0 %v877_v60, %s1967_s28  ;;  %v1252_v4 = vld [vmem:[#allocation8 + $0x30] sm:$0xff]  ;;  %v1253_v60 = vld [vmem:[#allocation8 + $0x38] sm:$0xff] }
 0x150   : > { %v1713_v61 = vpack.c.bf16 %v1253_v60, %v1252_v4  ;;  %v887_v60 = vmul.f32 %v2766_v21, %v2609_v54 }
 0x152   : > { %1714 = vmatprep.subr.bf16.mxu0 %v1713_v61  ;;  %1720 = vmatprep.subr.bf16.mxu1 %v1713_v61 }
 0x153   : > { %1080 = vrot.lane.b32.xlu1 %v1039_v46, %s1966_s15  ;;  %1064 = vrot.lane.b32.xlu0 %v1031_v19, %s1966_s15  ;;  %v629_v46 = vmul.f32 %v2520_v32, %v2686_v56  ;;  %v621_v19 = vmul.f32 %v2520_v32, %v2688_v37  ;;  %v494_v32 = vadd.f32 %v2570_v39, %v2437_v63 }
 0x154   : > { %1716 = vmatpush3.bf16.msra.mxu0 %v1713_v61  ;;  %1724 = vmatpush3.bf16.msra.mxu1 %v1713_v61  ;;  %v486_v56 = vadd.f32 %v2570_v39, %v2399_v49  ;;  %v495_v63 = vadd.f32 %v2570_v39, %v2441_v0  ;;  %v487_v49 = vadd.f32 %v2570_v39, %v2403_v50 }
 0x155   : > { %v1040_v0 = vmul.f32 %v2822_v59, %v2500_v26  ;;  %v1032_v50 = vmul.f32 %v2822_v59, %v2502_v27 }
 0x157   : > { %674 = vrot.lane.b32.xlu1 %v628_v22, %s1967_s28  ;;  %658 = vrot.lane.b32.xlu0 %v620_v25, %s1967_s28  ;;  %v1143_v22 = vmul.f32 %v2860_v58, %v2433_v62  ;;  %v1135_v25 = vmul.f32 %v2860_v58, %v2395_v48  ;;  %v886_v62 = vmul.f32 %v2766_v21, %v2549_v42 }
 0x158   : > { %v878_v48 = vmul.f32 %v2766_v21, %v2551_v55 }
 0x15b   : > { %826 = vrot.lane.b32.xlu1 %v782_v33, %s1966_s15  ;;  %810 = vrot.lane.b32.xlu0 %v774_v13, %s1966_s15 }
 0x15f   : > { %1182 = vrot.lane.b32.xlu1 %v1142_v9, %s1967_s28  ;;  %1166 = vrot.lane.b32.xlu0 %v1134_v10, %s1967_s28 }
 0x163   : > { %676 = vrot.lane.b32.xlu1 %v629_v46, %s1967_s28  ;;  %660 = vrot.lane.b32.xlu0 %v621_v19, %s1967_s28  ;;  %v879_v46 = vmul.f32 %v2766_v21, %v2555_v18  ;;  %v1041_v18 = vmul.f32 %v2822_v59, %v2504_v28 }
 0x167   : > { %828 = vrot.lane.b32.xlu1 %v783_v47, %s1966_s15  ;;  %812 = vrot.lane.b32.xlu0 %v775_v41, %s1966_s15  ;;  %v496_v47 = vadd.f32 %v2570_v39, %v2471_v14  ;;  %v3265_v14 = vld [vmem:[#allocation19_spill] sm:$0xff] }
 0x169   : > { %v559_v37 = vpop.permute.xlu1 %558  ;;  %v543_v40 = vpop.permute.xlu0 %542 }
 0x16a   : > { %v598_v12 = vadd.f32 %v559_v37, %v494_v32  ;;  %v590_v31 = vadd.f32 %v543_v40, %v486_v56  ;;  %v1033_v56 = vmul.f32 %v2822_v59, %v2557_v23 }
 0x16b   : > { %1184 = vrot.lane.b32.xlu1 %v1143_v22, %s1967_s28  ;;  %1168 = vrot.lane.b32.xlu0 %v1135_v25, %s1967_s28 }
 0x16d   : > { %v561_v3 = vpop.permute.xlu1 %560  ;;  %v545_v6 = vpop.permute.xlu0 %544 }
 0x16e   : > { %v599_v33 = vadd.f32 %v561_v3, %v495_v63  ;;  %v591_v13 = vadd.f32 %v545_v6, %v487_v49 }
 0x16f   : > { %930 = vrot.lane.b32.xlu1 %v886_v62, %s1967_s28  ;;  %914 = vrot.lane.b32.xlu0 %v878_v48, %s1967_s28  ;;  %v1144_v62 = vmul.f32 %v2860_v58, %v2500_v26  ;;  %v785_v26 = vmul.f32 %v2664_v35, %v2698_v44 }
 0x171   : > { %v663_v38 = vpop.permute.xlu1 %662  ;;  %v647_v45 = vpop.permute.xlu0 %646 }
 0x172   : > { %v702_v20 = vadd.f32 %v663_v38, %v598_v12  ;;  %v694_v9 = vadd.f32 %v647_v45, %v590_v31  ;;  %v784_v12 = vmul.f32 %v2664_v35, %v2690_v53  ;;  %v776_v31 = vmul.f32 %v2664_v35, %v2682_v43  ;;  %v3268_v45 = vld [vmem:[#allocation18_spill] sm:$0xff] }
 0x173   : > { %1082 = vrot.lane.b32.xlu1 %v1040_v0, %s1966_s15  ;;  %1066 = vrot.lane.b32.xlu0 %v1032_v50, %s1966_s15 }
 0x174   : > { %v754_v42 = vadd.f32 %v2445_v1, %v702_v20  ;;  %v746_v55 = vadd.f32 %v2407_v51, %v694_v9  ;;  %v488_v51 = vadd.f32 %v2570_v39, %v2475_v15  ;;  %v497_v15 = vadd.f32 %v2570_v39, %v3265_v14  ;;  %v3271_v14 = vld [vmem:[#allocation35_spill] sm:$0xff] }
 0x175   : > { %v665_v10 = vpop.permute.xlu1 %664  ;;  %v649_v4 = vpop.permute.xlu0 %648 }
 0x176   : > { %v703_v19 = vadd.f32 %v665_v10, %v599_v33  ;;  %v695_v61 = vadd.f32 %v649_v4, %v591_v13  ;;  %v3267_v13 = vld [vmem:[#allocation17_spill] sm:$0xff] }
 0x177   : > { %932 = vrot.lane.b32.xlu1 %v887_v60, %s1967_s28  ;;  %916 = vrot.lane.b32.xlu0 %v879_v46, %s1967_s28  ;;  %v1145_v46 = vmul.f32 %v2860_v58, %v2504_v28  ;;  %v888_v28 = vmul.f32 %v2766_v21, %v2690_v53  ;;  %v3274_v53 = vld [vmem:[#allocation32_spill] sm:$0xff] }
 0x178   : > { %v755_v1 = vadd.f32 %v2449_v2, %v703_v19  ;;  %v747_v41 = vadd.f32 %v2411_v52, %v695_v61  ;;  %v3266_v2 = vld [vmem:[#allocation20_spill] sm:$0xff]  ;;  %v1137_v19 = vmul.f32 %v2860_v58, %v2557_v23  ;;  %v880_v23 = vmul.f32 %v2766_v21, %v2682_v43 }
 0x179   : > { %v563_v54 = vpop.permute.xlu1 %562  ;;  %v547_v32 = vpop.permute.xlu0 %546  ;;  %v489_v52 = vadd.f32 %v2570_v39, %v3266_v2  ;;  %v1136_v39 = vmul.f32 %v2860_v58, %v2502_v27  ;;  %v777_v27 = vmul.f32 %v2664_v35, %v2708_v24  ;;  %v3269_v35 = vld [vmem:[#allocation21_spill] sm:$0xff]  ;;  %v3272_v2 = vld [vmem:[#allocation26_spill] sm:$0xff] }
 0x17a   : > { %v600_v37 = vadd.f32 %v563_v54, %v496_v47  ;;  %v592_v40 = vadd.f32 %v547_v32, %v488_v51 }
 0x17b   : > { %1084 = vrot.lane.b32.xlu1 %v1041_v18, %s1966_s15  ;;  %1068 = vrot.lane.b32.xlu0 %v1033_v56, %s1966_s15 }
 0x17d   : > { %v565_v22 = vpop.permute.xlu1 %564  ;;  %v549_v25 = vpop.permute.xlu0 %548 }
 0x17e   : > { %v601_v63 = vadd.f32 %v565_v22, %v497_v15  ;;  %v593_v49 = vadd.f32 %v549_v25, %v489_v52  ;;  %v1042_v15 = vmul.f32 %v2822_v59, %v3271_v14  ;;  %v1034_v52 = vmul.f32 %v2822_v59, %v3272_v2  ;;  %v3273_v22 = vld [vmem:[#allocation28_spill] sm:$0xff] }
 0x17f   : > { %830 = vrot.lane.b32.xlu1 %v784_v12, %s1966_s15  ;;  %814 = vrot.lane.b32.xlu0 %v776_v31, %s1966_s15  ;;  %v881_v31 = vmul.f32 %v2766_v21, %v2708_v24 }
 0x181   : > { %v667_v3 = vpop.permute.xlu1 %666  ;;  %v651_v6 = vpop.permute.xlu0 %650 }
 0x182   : > { %v704_v48 = vadd.f32 %v667_v3, %v600_v37  ;;  %v696_v33 = vadd.f32 %v651_v6, %v592_v40  ;;  %v3275_v3 = vld [vmem:[#allocation15_spill] sm:$0xff] }
 0x183   : > { %1186 = vrot.lane.b32.xlu1 %v1144_v62, %s1967_s28  ;;  %1170 = vrot.lane.b32.xlu0 %v1136_v39, %s1967_s28  ;;  %v3276_v62 = vld [vmem:[#allocation13_spill] sm:$0xff] }
 0x184   : > { %v2945_v38 = vadd.f32 %v3267_v13, %v704_v48  ;;  %v2948_v0 = vadd.f32 %v3268_v45, %v696_v33  ;;  %v3277_v13 = vld [vmem:[#allocation38_spill] sm:$0xff]  ;;  %v3278_v45 = vld [vmem:[#allocation27_spill] sm:$0xff] }
 0x185   : > { %v819_v50 = vpop.permute.xlu1 %818  ;;  %v803_v20 = vpop.permute.xlu0 %802  ;;  %v1035_v24 = vmul.f32 %v2822_v59, %v3278_v45 }
 0x186   : > { %v858_v9 = vadd.f32 %v819_v50, %v754_v42  ;;  %v850_v10 = vadd.f32 %v803_v20, %v746_v55  ;;  %v3270_v55 = vld [vmem:[#allocation22_spill] sm:$0xff]  ;;  %v3280_v20 = vld [vmem:[#allocation33_spill] sm:$0xff] }
 0x187   : > { %832 = vrot.lane.b32.xlu1 %v785_v26, %s1966_s15  ;;  %816 = vrot.lane.b32.xlu0 %v777_v27, %s1966_s15 }
 0x189   : > { %v669_v4 = vpop.permute.xlu1 %668  ;;  %v653_v60 = vpop.permute.xlu0 %652 }
 0x18a   : > { %v705_v61 = vadd.f32 %v669_v4, %v601_v63  ;;  %v697_v47 = vadd.f32 %v653_v60, %v593_v49  ;;  %v1138_v4 = vmul.f32 %v2860_v58, %v3272_v2 }
 0x18b   : > { %1188 = vrot.lane.b32.xlu1 %v1145_v46, %s1967_s28  ;;  %1172 = vrot.lane.b32.xlu0 %v1137_v19, %s1967_s28  ;;  %v3281_v19 = vld [vmem:[#allocation16_spill] sm:$0xff] }
 0x18c   : > { %v2963_v42 = vadd.f32 %v3269_v35, %v705_v61  ;;  %v2966_v51 = vadd.f32 %v3270_v55, %v697_v47  ;;  %v3282_v47 = vld [vmem:[#allocation14_spill] sm:$0xff] }
 0x18d   : > { %v821_v54 = vpop.permute.xlu1 %820  ;;  %v805_v32 = vpop.permute.xlu0 %804 }
 0x18e   : > { %v859_v18 = vadd.f32 %v821_v54, %v755_v1  ;;  %v851_v56 = vadd.f32 %v805_v32, %v747_v41  ;;  %v889_v41 = vmul.f32 %v2766_v21, %v2698_v44  ;;  %v1043_v44 = vmul.f32 %v2822_v59, %v3277_v13  ;;  %v3279_v21 = vld [vmem:[#allocation42_spill] sm:$0xff] }
 0x18f   : > { %934 = vrot.lane.b32.xlu1 %v888_v28, %s1967_s28  ;;  %918 = vrot.lane.b32.xlu0 %v880_v23, %s1967_s28  ;;  %v1147_v32 = vmul.f32 %v2860_v58, %v3277_v13  ;;  %v1139_v28 = vmul.f32 %v2860_v58, %v3278_v45 }
 0x191   : > { %v567_v37 = vpop.permute.xlu1 %566  ;;  %v551_v40 = vpop.permute.xlu0 %550 }
 0x192   : > { %v602_v25 = vadd.f32 %v567_v37, %v3273_v22  ;;  %v594_v12 = vadd.f32 %v551_v40, %v3274_v53  ;;  %v3284_v40 = vld [vmem:[#allocation30_spill] sm:$0xff]  ;;  %v1036_v22 = vmul.f32 %v2822_v59, %v2702_v8 }
 0x193   : > { %1086 = vrot.lane.b32.xlu1 %v1042_v15, %s1966_s15  ;;  %1070 = vrot.lane.b32.xlu0 %v1034_v52, %s1966_s15  ;;  %v1044_v52 = vmul.f32 %v2822_v59, %v2700_v7 }
 0x195   : > { %v923_v43 = vpop.permute.xlu1 %922  ;;  %v907_v1 = vpop.permute.xlu0 %906 }
 0x196   : > { %v962_v63 = vadd.f32 %v923_v43, %v858_v9  ;;  %v954_v49 = vadd.f32 %v907_v1, %v850_v10  ;;  %v1146_v10 = vmul.f32 %v2860_v58, %v3271_v14  ;;  %v1045_v1 = vmul.f32 %v2822_v59, %v2710_v36 }
 0x197   : > { %936 = vrot.lane.b32.xlu1 %v889_v41, %s1967_s28  ;;  %920 = vrot.lane.b32.xlu0 %v881_v31, %s1967_s28  ;;  %v1037_v41 = vmul.f32 %v2822_v59, %v2712_v57  ;;  %v1140_v59 = vmul.f32 %v2860_v58, %v2702_v8 }
 0x198   : > { %v2989_v6 = vadd.f32 %v3275_v3, %v962_v63  ;;  %v2992_v39 = vadd.f32 %v3276_v62, %v954_v49  ;;  %v3286_v49 = vld [vmem:[#allocation31_spill] sm:$0xff] }
 0x199   : > { %v569_v48 = vpop.permute.xlu1 %568  ;;  %v553_v33 = vpop.permute.xlu0 %552 }
 0x19a   : > { %v603_v50 = vadd.f32 %v569_v48, %v3279_v21  ;;  %v595_v26 = vadd.f32 %v553_v33, %v3280_v20  ;;  %v1148_v33 = vmul.f32 %v2860_v58, %v2700_v7  ;;  %v1149_v21 = vmul.f32 %v2860_v58, %v2710_v36 }
 0x19b   : > { %1088 = vrot.lane.b32.xlu1 %v1043_v44, %s1966_s15  ;;  %1072 = vrot.lane.b32.xlu0 %v1035_v24, %s1966_s15 }
 0x19d   : > { %v925_v27 = vpop.permute.xlu1 %924  ;;  %v909_v9 = vpop.permute.xlu0 %908 }
 0x19e   : > { %v963_v60 = vadd.f32 %v925_v27, %v859_v18  ;;  %v955_v46 = vadd.f32 %v909_v9, %v851_v56  ;;  %v3283_v56 = vld [vmem:[#allocation29_spill] sm:$0xff]  ;;  %v3287_v27 = vld [vmem:[#allocation23_spill] sm:$0xff] }
 0x19f   : > { %1190 = vrot.lane.b32.xlu1 %v1146_v10, %s1967_s28  ;;  %1174 = vrot.lane.b32.xlu0 %v1138_v4, %s1967_s28  ;;  %v3288_v10 = vld [vmem:[#allocation24_spill] sm:$0xff] }
 0x1a0   : > { %v3009_v61 = vadd.f32 %v3281_v19, %v963_v60  ;;  %v3012_v35 = vadd.f32 %v3282_v47, %v955_v46 }
 0x1a1   : > { %v671_v55 = vpop.permute.xlu1 %670  ;;  %v655_v54 = vpop.permute.xlu0 %654 }
 0x1a2   : > { %v706_v23 = vadd.f32 %v671_v55, %v602_v25  ;;  %v698_v18 = vadd.f32 %v655_v54, %v594_v12  ;;  %v3289_v54 = vld [vmem:[#allocation25_spill] sm:$0xff] }
 0x1a3   : > { %1192 = vrot.lane.b32.xlu1 %v1147_v32, %s1967_s28  ;;  %1176 = vrot.lane.b32.xlu0 %v1139_v28, %s1967_s28  ;;  %v3290_v28 = vld [vmem:[#allocation34_spill] sm:$0xff] }
 0x1a4   : > { %v3021_v37 = vadd.f32 %v3283_v56, %v706_v23  ;;  %v3024_v14 = vadd.f32 %v3284_v40, %v698_v18 }
 0x1a5   : > { %v823_v15 = vpop.permute.xlu1 %822  ;;  %v807_v2 = vpop.permute.xlu0 %806 }
 0x1a6   : > { %v860_v25 = vadd.f32 %v823_v15, %v2945_v38  ;;  %v852_v53 = vadd.f32 %v807_v2, %v2948_v0  ;;  %v3285_v38 = vld [vmem:[#allocation39_spill] sm:$0xff] }
 0x1a7   : > { %1090 = vrot.lane.b32.xlu1 %v1044_v52, %s1966_s15  ;;  %1074 = vrot.lane.b32.xlu0 %v1036_v22, %s1966_s15 }
 0x1a9   : > { %v673_v12 = vpop.permute.xlu1 %672  ;;  %v657_v43 = vpop.permute.xlu0 %656 }
 0x1aa   : > { %v707_v31 = vadd.f32 %v673_v12, %v603_v50  ;;  %v699_v63 = vadd.f32 %v657_v43, %v595_v26  ;;  %v1141_v50 = vmul.f32 %v2860_v58, %v2712_v57 }
 0x1ab   : > { %1092 = vrot.lane.b32.xlu1 %v1045_v1, %s1966_s15  ;;  %1076 = vrot.lane.b32.xlu0 %v1037_v41, %s1966_s15  ;;  %s1890_s15 = sshll.u32 %s1968_s24, 4  ;;  %s1891_s15 = int_to_ptr.vmem [resolvable:$false] %s1890_s15 }
 0x1ac   : > { %v3041_v0 = vadd.f32 %v3285_v38, %v707_v31  ;;  %v3044_v3 = vadd.f32 %v3286_v49, %v699_v63  ;;  %s1892_s16 = scalar_lea.vmem %s1891_s15, 4096  ;;  %p1893_p7 = scmp.lt.s32.totalorder %s3154_s17, %s1891_s15 }
 0x1ad   : > { %v825_v62 = vpop.permute.xlu1 %824  ;;  %v809_v48 = vpop.permute.xlu0 %808  ;;  %p1894_p9 = scmp.lt.s32.totalorder %s1892_s16, %s1886_s12 }
 0x1ae   : > { %v861_v13 = vadd.f32 %v825_v62, %v2963_v42  ;;  %v853_v44 = vadd.f32 %v809_v48, %v2966_v51 }
 0x1af   : > { %1194 = vrot.lane.b32.xlu1 %v1148_v33, %s1967_s28  ;;  %1178 = vrot.lane.b32.xlu0 %v1140_v59, %s1967_s28  ;;  %v3292_v59 = vld [vmem:[#allocation44_spill] sm:$0xff]  ;;  %p1895_p12 = por %p1894_p9, %p1893_p7 }
 0x1b1   : > { %v571_v45 = vpop.permute.xlu1 %570  ;;  %v555_v24 = vpop.permute.xlu0 %554  ;;  %p1896_p1 = pnand %p1895_p12, %p1889_p3 }
 0x1b2   : > { %v604_v7 = vadd.f32 %v571_v45, %v2715_v34  ;;  %v596_v8 = vadd.f32 %v555_v24, %v2728_v30 }
 0x1b3   : > { %1196 = vrot.lane.b32.xlu1 %v1149_v21, %s1967_s28  ;;  %1180 = vrot.lane.b32.xlu0 %v1141_v50, %s1967_s28 }
 0x1b5   : > { %v927_v42 = vpop.permute.xlu1 %926  ;;  %v911_v51 = vpop.permute.xlu0 %910 }
 0x1b6   : > { %v964_v20 = vadd.f32 %v927_v42, %v860_v25  ;;  %v956_v26 = vadd.f32 %v911_v51, %v852_v53 }
 0x1b8   : > { %v3063_v9 = vadd.f32 %v3287_v27, %v964_v20  ;;  %v3066_v36 = vadd.f32 %v3288_v10, %v956_v26 }
 0x1b9   : > { %v1079_v4 = vpop.permute.xlu1 %1078  ;;  %v1063_v57 = vpop.permute.xlu0 %1062 }
 0x1ba   : > { %v1118_v12 = vadd.f32 %v1079_v4, %v2989_v6  ;;  %v1110_v43 = vadd.f32 %v1063_v57, %v2992_v39  ;;  %v3294_v57 = vld [vmem:[#allocation36_spill] sm:$0xff] }
 0x1bd   : > { %v573_v58 = vpop.permute.xlu1 %572  ;;  %v557_v34 = vpop.permute.xlu0 %556 }
 0x1be   : > { %v605_v30 = vadd.f32 %v573_v58, %v2731_v29  ;;  %v597_v60 = vadd.f32 %v557_v34, %v2744_v16  ;;  %v3291_v16 = vld [vmem:[#allocation43_spill] sm:$0xff] }
 0x1c1   : > { %v929_v46 = vpop.permute.xlu1 %928  ;;  %v913_v19 = vpop.permute.xlu0 %912 }
 0x1c2   : > { %v965_v47 = vadd.f32 %v929_v46, %v861_v13  ;;  %v957_v55 = vadd.f32 %v913_v19, %v853_v44 }
 0x1c4   : > { %v3071_v32 = vadd.f32 %v3289_v54, %v965_v47  ;;  %v3074_v23 = vadd.f32 %v3290_v28, %v957_v55  ;;  %v3295_v55 = vld [vmem:[#allocation41_spill] sm:$0xff] }
 0x1c5   : > { %v1081_v18 = vpop.permute.xlu1 %1080  ;;  %v1065_v56 = vpop.permute.xlu0 %1064  ;;  %v3296_v28 = vld [vmem:[#allocation37_spill] sm:$0xff] }
 0x1c6   : > { %v1119_v45 = vadd.f32 %v1081_v18, %v3009_v61  ;;  %v1111_v24 = vadd.f32 %v1065_v56, %v3012_v35  ;;  %v3293_v61 = vld [vmem:[#allocation40_spill] sm:$0xff] }
 0x1c9   : > { %v675_v40 = vpop.permute.xlu1 %674  ;;  %v659_v15 = vpop.permute.xlu0 %658 }
 0x1ca   : > { %v708_v2 = vadd.f32 %v675_v40, %v604_v7  ;;  %v700_v52 = vadd.f32 %v659_v15, %v596_v8 }
 0x1cc   : > { %v3077_v29 = vadd.f32 %v2721_v17, %v708_v2  ;;  %v3080_v22 = vadd.f32 %v3291_v16, %v700_v52 }
 0x1cd   : > { %v827_v25 = vpop.permute.xlu1 %826  ;;  %v811_v53 = vpop.permute.xlu0 %810 }
 0x1ce   : > { %v862_v42 = vadd.f32 %v827_v25, %v3021_v37  ;;  %v854_v51 = vadd.f32 %v811_v53, %v3024_v14 }
 0x1d1   : > { %v1183_v1 = vpop.permute.xlu1 %1182  ;;  %v1167_v41 = vpop.permute.xlu0 %1166 }
 0x1d2   : > { %v1222_v31 = vadd.f32 %v1183_v1, %v1118_v12  ;;  %v1214_v63 = vadd.f32 %v1167_v41, %v1110_v43 }
 0x1d4   : > { %v1238_v38 = vmax.f32 %v1222_v31, 0.0  ;;  %v1230_v49 = vmax.f32 %v1214_v63, 0.0 }
 0x1d5   : > { %v677_v62 = vpop.permute.xlu1 %676  ;;  %v661_v48 = vpop.permute.xlu0 %660 }
 0x1d6   : > { %v709_v17 = vadd.f32 %v677_v62, %v605_v30  ;;  %v701_v33 = vadd.f32 %v661_v48, %v597_v60  ;;  %1677 = vmatprep.mubr.msk.f32.mxu0 %vm1261_vm6, %v1230_v49  ;;  %1689 = vmatprep.mubr.msk.f32.mxu1 %vm1261_vm6, %v1238_v38 }
 0x1d8   : > { %v3087_v13 = vadd.f32 %v3292_v59, %v709_v17  ;;  %v3090_v6 = vadd.f32 %v2739_v11, %v701_v33 }
 0x1d9   : > { %v829_v39 = vpop.permute.xlu1 %828  ;;  %v813_v44 = vpop.permute.xlu0 %812 }
 0x1da   : > { %v863_v37 = vadd.f32 %v829_v39, %v3041_v0  ;;  %v855_v14 = vadd.f32 %v813_v44, %v3044_v3 }
 0x1dd   : > { %v1185_v21 = vpop.permute.xlu1 %1184  ;;  %v1169_v50 = vpop.permute.xlu0 %1168 }
 0x1de   : > { %v1223_v7 = vadd.f32 %v1185_v21, %v1119_v45  ;;  %v1215_v8 = vadd.f32 %v1169_v50, %v1111_v24 }
 0x1e0   : > { %v1239_v20 = vmax.f32 %v1223_v7, 0.0  ;;  %v1231_v26 = vmax.f32 %v1215_v8, 0.0 }
 0x1e1   : > { %v931_v27 = vpop.permute.xlu1 %930  ;;  %v915_v10 = vpop.permute.xlu0 %914 }
 0x1e2   : > { %v966_v11 = vadd.f32 %v931_v27, %v862_v42  ;;  %v958_v4 = vadd.f32 %v915_v10, %v854_v51  ;;  %1678 = vmatmul.mubr.msk.f32.vlgmr.msra.gmra.mrb[0].mxu0 %vm1261_vm6, %v1231_v26  ;;  %1690 = vmatmul.mubr.msk.f32.vlgmr.msra.gmra.mrb[0].mxu1 %vm1261_vm6, %v1239_v20  ;;  %v3298_v20 = vld [vmem:[#allocation46_spill] sm:$0xff]  ;;  %v3299_v27 = vld [vmem:[#allocation47_spill] sm:$0xff] }
 0x1e4   : > { %v1018_v35 = vadd.f32 %v3293_v61, %v966_v11  ;;  %v1010_v58 = vadd.f32 %v3294_v57, %v958_v4 }
 0x1e5   : > { %v1083_v34 = vpop.permute.xlu1 %1082  ;;  %v1067_v30 = vpop.permute.xlu0 %1066 }
 0x1e6   : > { %v1120_v52 = vadd.f32 %v1083_v34, %v3063_v9  ;;  %v1112_v16 = vadd.f32 %v1067_v30, %v3066_v36 }
 0x1e9   : > { %v933_v60 = vpop.permute.xlu1 %932  ;;  %v917_v46 = vpop.permute.xlu0 %916 }
 0x1ea   : > { %v967_v19 = vadd.f32 %v933_v60, %v863_v37  ;;  %v959_v47 = vadd.f32 %v917_v46, %v855_v14 }
 0x1ec   : > { %v1019_v54 = vadd.f32 %v3295_v55, %v967_v19  ;;  %v1011_v18 = vadd.f32 %v3296_v28, %v959_v47 }
 0x1ed   : > { %v1085_v56 = vpop.permute.xlu1 %1084  ;;  %v1069_v40 = vpop.permute.xlu0 %1068 }
 0x1ee   : > { %v1121_v31 = vadd.f32 %v1085_v56, %v3071_v32  ;;  %v1113_v63 = vadd.f32 %v1069_v40, %v3074_v23  ;;  %v3297_v23 = vld [vmem:[#allocation45_spill] sm:$0xff] }
 0x1f1   : > { %v831_v15 = vpop.permute.xlu1 %830  ;;  %v815_v2 = vpop.permute.xlu0 %814 }
 0x1f2   : > { %v864_v62 = vadd.f32 %v831_v15, %v3077_v29  ;;  %v856_v48 = vadd.f32 %v815_v2, %v3080_v22 }
 0x1f5   : > { %v1187_v25 = vpop.permute.xlu1 %1186  ;;  %v1171_v0 = vpop.permute.xlu0 %1170 }
 0x1f6   : > { %v1224_v53 = vadd.f32 %v1187_v25, %v1120_v52  ;;  %v1216_v3 = vadd.f32 %v1171_v0, %v1112_v16 }
 0x1f8   : > { %v1240_v12 = vmax.f32 %v1224_v53, 0.0  ;;  %v1232_v43 = vmax.f32 %v1216_v3, 0.0 }
 0x1f9   : > { %v833_v1 = vpop.permute.xlu1 %832  ;;  %v817_v41 = vpop.permute.xlu0 %816 }
 0x1fa   : > { %1680 = vmatprep.mubr.msk.f32.mxu0 %vm1261_vm6, %v1232_v43  ;;  %1692 = vmatprep.mubr.msk.f32.mxu1 %vm1261_vm6, %v1240_v12  ;;  %v865_v29 = vadd.f32 %v833_v1, %v3087_v13  ;;  %v857_v22 = vadd.f32 %v817_v41, %v3090_v6 }
 0x1fd   : > { %v1189_v38 = vpop.permute.xlu1 %1188  ;;  %v1173_v9 = vpop.permute.xlu0 %1172 }
 0x1fe   : > { %v1225_v49 = vadd.f32 %v1189_v38, %v1121_v31  ;;  %v1217_v36 = vadd.f32 %v1173_v9, %v1113_v63  ;;  %v1610_v9 = vld [vmem:[%s3207_s4] ss:$0 sm:$0xff] }
 0x200   : > { %v1241_v17 = vmax.f32 %v1225_v49, 0.0  ;;  %v1233_v33 = vmax.f32 %v1217_v36, 0.0 }
 0x201   : > { %v935_v59 = vpop.permute.xlu1 %934  ;;  %v919_v39 = vpop.permute.xlu0 %918 }
 0x202   : > { %v968_v44 = vadd.f32 %v935_v59, %v864_v62  ;;  %v960_v45 = vadd.f32 %v919_v39, %v856_v48  ;;  %1681 = vmatmul.mubr.msk.f32.gmra.mrb[2].mxu0 %vm1261_vm6, %v1233_v33  ;;  %1693 = vmatmul.mubr.msk.f32.gmra.mrb[2].mxu1 %vm1261_vm6, %v1241_v17 }
 0x204   : > { %v1020_v32 = vadd.f32 %v2748_v5, %v968_v44  ;;  %v1012_v24 = vadd.f32 %v3297_v23, %v960_v45 }
 0x205   : > { %v1087_v21 = vpop.permute.xlu1 %1086  ;;  %v1071_v50 = vpop.permute.xlu0 %1070 }
 0x206   : > { %v1122_v61 = vadd.f32 %v1087_v21, %v1018_v35  ;;  %v1114_v5 = vadd.f32 %v1071_v50, %v1010_v58 }
 0x209   : > { %v937_v7 = vpop.permute.xlu1 %936  ;;  %v921_v8 = vpop.permute.xlu0 %920 }
 0x20a   : > { %v969_v42 = vadd.f32 %v937_v7, %v865_v29  ;;  %v961_v51 = vadd.f32 %v921_v8, %v857_v22 }
 0x20c   : > { %v1021_v26 = vadd.f32 %v3298_v20, %v969_v42  ;;  %v1013_v10 = vadd.f32 %v3299_v27, %v961_v51 }
 0x20d   : > { %v1089_v11 = vpop.permute.xlu1 %1088  ;;  %v1073_v4 = vpop.permute.xlu0 %1072 }
 0x20e   : > { %v1123_v14 = vadd.f32 %v1089_v11, %v1019_v54  ;;  %v1115_v13 = vadd.f32 %v1073_v4, %v1011_v18 }
 0x211   : > { %v1191_v57 = vpop.permute.xlu1 %1190  ;;  %v1175_v34 = vpop.permute.xlu0 %1174 }
 0x212   : > { %v1226_v30 = vadd.f32 %v1191_v57, %v1122_v61  ;;  %v1218_v37 = vadd.f32 %v1175_v34, %v1114_v5 }
 0x214   : > { %v1242_v60 = vmax.f32 %v1226_v30, 0.0  ;;  %v1234_v6 = vmax.f32 %v1218_v37, 0.0 }
 0x215   : > { %v1193_v46 = vpop.permute.xlu1 %1192  ;;  %v1177_v19 = vpop.permute.xlu0 %1176 }
 0x216   : > { %v1227_v47 = vadd.f32 %v1193_v46, %v1123_v14  ;;  %v1219_v55 = vadd.f32 %v1177_v19, %v1115_v13  ;;  %1683 = vmatprep.mubr.msk.f32.mxu0 %vm1261_vm6, %v1234_v6  ;;  %1695 = vmatprep.mubr.msk.f32.mxu1 %vm1261_vm6, %v1242_v60 }
 0x218   : > { %v1243_v28 = vmax.f32 %v1227_v47, 0.0  ;;  %v1235_v56 = vmax.f32 %v1219_v55, 0.0 }
 0x219   : > { %v1091_v35 = vpop.permute.xlu1 %1090  ;;  %v1075_v58 = vpop.permute.xlu0 %1074 }
 0x21a   : > { %1684 = vmatmul.mubr.msk.f32.gmra.mrb[4].mxu0 %vm1261_vm6, %v1235_v56  ;;  %1696 = vmatmul.mubr.msk.f32.gmra.mrb[4].mxu1 %vm1261_vm6, %v1243_v28  ;;  %v1124_v40 = vadd.f32 %v1091_v35, %v1020_v32  ;;  %v1116_v15 = vadd.f32 %v1075_v58, %v1012_v24 }
 0x21d   : > { %v1093_v54 = vpop.permute.xlu1 %1092  ;;  %v1077_v18 = vpop.permute.xlu0 %1076 }
 0x21e   : > { %v1125_v0 = vadd.f32 %v1093_v54, %v1021_v26  ;;  %v1117_v53 = vadd.f32 %v1077_v18, %v1013_v10 }
 0x221   : > { %v1195_v2 = vpop.permute.xlu1 %1194  ;;  %v1179_v52 = vpop.permute.xlu0 %1178 }
 0x222   : > { %v1228_v16 = vadd.f32 %v1195_v2, %v1124_v40  ;;  %v1220_v25 = vadd.f32 %v1179_v52, %v1116_v15 }
 0x224   : > { %v1244_v3 = vmax.f32 %v1228_v16, 0.0  ;;  %v1236_v12 = vmax.f32 %v1220_v25, 0.0 }
 0x225   : > { %v1197_v43 = vpop.permute.xlu1 %1196  ;;  %v1181_v1 = vpop.permute.xlu0 %1180 }
 0x226   : > { %v1229_v41 = vadd.f32 %v1197_v43, %v1125_v0  ;;  %v1221_v31 = vadd.f32 %v1181_v1, %v1117_v53  ;;  %1686 = vmatprep.mubr.msk.f32.mxu0 %vm1261_vm6, %v1236_v12  ;;  %1698 = vmatprep.mubr.msk.f32.mxu1 %vm1261_vm6, %v1244_v3 }
 0x228   : > { %v1245_v63 = vmax.f32 %v1229_v41, 0.0  ;;  %v1237_v38 = vmax.f32 %v1221_v31, 0.0 }
 0x22a   : > { %1687 = vmatmul.mubr.msk.f32.gmra.mrb[6].mxu0 %vm1261_vm6, %v1237_v38  ;;  %1699 = vmatmul.mubr.msk.f32.gmra.mrb[6].mxu1 %vm1261_vm6, %v1245_v63 }
 0x2b5   : > { %v1679_v49 = vpop.f32.mrb[0].mxu0  ;;  %v1691_v36 = vpop.f32.mrb[0].mxu1 }
 0x2b6   : > { %v1382_v62 = vadd.f32 %v1679_v49, %v1610_v9  ;;  %v1422_v48 = vadd.f32 %v1691_v36, %v1610_v9  ;;  %v1376_v17 = vpop.f32.mrb[1].mxu0  ;;  %v1416_v33 = vpop.f32.mrb[1].mxu1 }
 0x2b7   : > { %v1377_v59 = vadd.f32 %v1610_v9, %v1376_v17  ;;  %v1417_v39 = vadd.f32 %v1610_v9, %v1416_v33 }
 0x2b8   : > { %v1456_v44 = vmax.f32 %v1382_v62, 0.0  ;;  %v1464_v45 = vmax.f32 %v1422_v48, 0.0 }
 0x2b9   : > { %v1455_v32 = vmax.f32 %v1377_v59, 0.0  ;;  %v1463_v23 = vmax.f32 %v1417_v39, 0.0 }
 0x2ba   : > { %1472 = vst [vmem:[%s3133_s30 + $0x8] sm:$0xff] %v1456_v44  ;;  %1480 = vst [vmem:[%s3133_s30 + $0x48] sm:$0xff] %v1464_v45 }
 0x2bb   : > { %1471 = vst [vmem:[%s3133_s30] sm:$0xff] %v1455_v32  ;;  %1479 = vst [vmem:[%s3133_s30 + $0x40] sm:$0xff] %v1463_v23 }
 0x2d5   : > { %v1682_v24 = vpop.f32.mrb[2].mxu0  ;;  %v1694_v21 = vpop.f32.mrb[2].mxu1 }
 0x2d6   : > { %v1392_v50 = vadd.f32 %v1682_v24, %v1610_v9  ;;  %v1432_v29 = vadd.f32 %v1694_v21, %v1610_v9  ;;  %v1386_v22 = vpop.f32.mrb[3].mxu0  ;;  %v1426_v7 = vpop.f32.mrb[3].mxu1 }
 0x2d7   : > { %v1387_v8 = vadd.f32 %v1610_v9, %v1386_v22  ;;  %v1427_v42 = vadd.f32 %v1610_v9, %v1426_v7 }
 0x2d8   : > { %v1458_v51 = vmax.f32 %v1392_v50, 0.0  ;;  %v1466_v20 = vmax.f32 %v1432_v29, 0.0 }
 0x2d9   : > { %v1457_v26 = vmax.f32 %v1387_v8, 0.0  ;;  %v1465_v27 = vmax.f32 %v1427_v42, 0.0 }
 0x2da   : > { %1474 = vst [vmem:[%s3133_s30 + $0x18] sm:$0xff] %v1458_v51  ;;  %1482 = vst [vmem:[%s3133_s30 + $0x58] sm:$0xff] %v1466_v20 }
 0x2db   : > { %1473 = vst [vmem:[%s3133_s30 + $0x10] sm:$0xff] %v1457_v26  ;;  %1481 = vst [vmem:[%s3133_s30 + $0x50] sm:$0xff] %v1465_v27 }
 0x2ed   : > { %v1685_v10 = vpop.f32.mrb[4].mxu0  ;;  %v1697_v11 = vpop.f32.mrb[4].mxu1 }
 0x2ee   : > { %v1402_v4 = vadd.f32 %v1685_v10, %v1610_v9  ;;  %v1442_v61 = vadd.f32 %v1697_v11, %v1610_v9  ;;  %v1396_v5 = vpop.f32.mrb[5].mxu0  ;;  %v1436_v57 = vpop.f32.mrb[5].mxu1 }
 0x2ef   : > { %v1397_v34 = vadd.f32 %v1610_v9, %v1396_v5  ;;  %v1437_v30 = vadd.f32 %v1610_v9, %v1436_v57 }
 0x2f0   : > { %v1460_v37 = vmax.f32 %v1402_v4, 0.0  ;;  %v1468_v14 = vmax.f32 %v1442_v61, 0.0 }
 0x2f1   : > { %v1459_v13 = vmax.f32 %v1397_v34, 0.0  ;;  %v1467_v60 = vmax.f32 %v1437_v30, 0.0 }
 0x2f2   : > { %1476 = vst [vmem:[%s3133_s30 + $0x28] sm:$0xff] %v1460_v37  ;;  %1484 = vst [vmem:[%s3133_s30 + $0x68] sm:$0xff] %v1468_v14 }
 0x2f3   : > { %1475 = vst [vmem:[%s3133_s30 + $0x20] sm:$0xff] %v1459_v13  ;;  %1483 = vst [vmem:[%s3133_s30 + $0x60] sm:$0xff] %v1467_v60 }
 0x2fd   : > { %v1688_v6 = vpop.f32.mrb[6].mxu0  ;;  %v1700_v46 = vpop.f32.mrb[6].mxu1 }
 0x2fe   : > { %v1412_v19 = vadd.f32 %v1688_v6, %v1610_v9  ;;  %v1452_v47 = vadd.f32 %v1700_v46, %v1610_v9  ;;  %v1406_v55 = vpop.f32.mrb[7].mxu0  ;;  %v1446_v28 = vpop.f32.mrb[7].mxu1 }
 0x2ff   : > { %v1407_v56 = vadd.f32 %v1610_v9, %v1406_v55  ;;  %v1447_v35 = vadd.f32 %v1610_v9, %v1446_v28 }
 0x300   : > { %v1462_v58 = vmax.f32 %v1412_v19, 0.0  ;;  %v1470_v54 = vmax.f32 %v1452_v47, 0.0 }
 0x301   : > { %v1461_v18 = vmax.f32 %v1407_v56, 0.0  ;;  %v1469_v40 = vmax.f32 %v1447_v35, 0.0 }
 0x302   : > { %1478 = vst [vmem:[%s3133_s30 + $0x38] sm:$0xff] %v1462_v58  ;;  %1486 = vst [vmem:[%s3133_s30 + $0x78] sm:$0xff] %v1470_v54 }
 0x303   : > { %1477 = vst [vmem:[%s3133_s30 + $0x30] sm:$0xff] %v1461_v18  ;;  %1485 = vst [vmem:[%s3133_s30 + $0x70] sm:$0xff] %v1469_v40 }
 0x304   : > { %1899 = shalt.err (!%p1896_p1)
}
 0x305   : > { %s1900_s10 = scalar_lea.hbm %s3152_s8, 2048  ;;  %s1904_s9 = scalar_lea.hbm %s3208_s5, 4096 }
 0x306   : > { %p1901_p13 = scmp.ne.s32.totalorder %s3152_s8, %s1900_s10  ;;  %p1905_p4 = scmp.lt.u32.totalorder %s3152_s8, %s3208_s5 }
 0x307   : > { %p1906_p5 = scmp.lt.u32.totalorder %s1904_s9, %s1900_s10  ;;  %p1908_p11 = scmp.lt.u32.totalorder %s1900_s10, %s3152_s8 }
 0x308   : > { %p1902_p6 = pnand %p1901_p13, %p3300_p0 }
 0x309   : > { %p1907_p8 = por %p1906_p5, %p1905_p4 }
 0x30a   : > { %p1903_p10 = pneg %p1902_p6 }
 0x30b   : > { %p1909_p2 = por %p1908_p11, %p1907_p8 }
 0x30d   : > { %p1910_p3 = pnand %p1909_p2, %p1903_p10 }
 0x30f   : > { %1913 = shalt.err (!%p1910_p3)
}
 0x310   : > { %s1969_s7 = smov 128  }
 0x311   : > { %1735 = dma.vmem_to_hbm [thread:$0]  (%p3300_p0), %s3154_s17, 2048, %s3152_s8, %s1488_s22, %s1969_s7, %s1969_s7, %s1965_s26  }
 0x312 PF: > { %s1517_s6 = sand.u32 1, %s1944_s18   ;;  %p3301_p7 = scmp.ne.s32.totalorder %s3221_s25, 0 }
 0x313   : > { %p3302_p9 = scmp.ge.s32.totalorder %s1956_s21, 2  ;;  %s1518_s12 = scalar_lea.sflag [#allocation5], %s1517_s6 }
 0x315   : > { %p1749_p12 = pnand %p3302_p9, %p3301_p7 }
 0x317   : > { %1939 = dma.done.wait (!%p1749_p12), %s1518_s12, 2048  }
 0x318   : > { %1941 = vsyncadd (!%p1749_p12), %s1518_s12, 4294965248  ;;  %p19_p1 = scmp.ge.s32.totalorder %s2116_s29, 4   ;;  %s3303_s18 = smov %s1948_s19 }
 0x319   : > { %s3304_s19 = smov %s1952_s20  ;;  %s3305_s20 = smov %s2132_s27 }
 0x31a   : > { %s3306_s21 = smov %s2116_s29  ;;  %21 = sbr.rel (!%p19_p1) target bundleno = 6 (0x6), region = 93 }
 0x321   :  { %1523 = vsyncpa [#allocation4], 1 }
 0x322   :  { %1525 = vsyncpa [#allocation4 + $0x1], 1 }
 0x323   :  { %1526 = vsyncpa [#allocation7], 1 }
 0x324   :  { %1527 = vsyncpa [#allocation5], 1 }
 0x325   :  { %1529 = vsyncpa [#allocation5 + $0x1], 1 }

</bundles_post_ra>
